<compile_context>
chip_gen: v5e
topology: v5e:2x2
jax: 0.10.0
libtpu: 0.0.40
codegen_flags: <defaults>
</compile_context>

<pallas_src>
import functools

import jax
import jax.numpy as jnp
from jax import lax
from jax.experimental import pallas as pl
from jax.experimental.pallas import tpu as pltpu


def _round_up(a, m):
    return ((a + m - 1) // m) * m


def _pinn_kernel(x_ref,
                 w_in_ref, b_in_ref,
                 w_h_ref, b_h_ref,
                 w_out_ref, b_out_ref,
                 out_ref,
                 *, num_hidden_layers, chunk, num_chunks, compute_dtype):
    def chunk_body(c, carry):
        off = pl.multiple_of(c * chunk, chunk)
        x0 = x_ref[0:1, pl.ds(off, chunk)]                 # (1, chunk) lane-dense
        x1 = x_ref[1:2, pl.ds(off, chunk)]
        x2 = x_ref[2:3, pl.ds(off, chunk)]

        # Input layer as rank-1 outer products on the VPU (K=3 would waste an MXU pass).
        h = (w_in_ref[:, 0:1] * x0
             + w_in_ref[:, 1:2] * x1
             + w_in_ref[:, 2:3] * x2
             + b_in_ref[...])                              # (H, chunk) f32
        h = jnp.tanh(h.astype(compute_dtype))              # EUP (bf16 on v6e/v7x)

        # Hidden layers: (H,H) @ (H,chunk) on the MXU, f32 accumulate, statically unrolled.
        for l in range(num_hidden_layers):
            pre = jnp.dot(w_h_ref[l], h,
                          preferred_element_type=jnp.float32) + b_h_ref[l]
            h = jnp.tanh(pre.astype(compute_dtype))

        # Output layer on the MXU: (1,H) @ (H,chunk) -> lane-dense (1, chunk).
        y = jnp.dot(w_out_ref[...], h,
                    preferred_element_type=jnp.float32) + b_out_ref[...]
        out_ref[:, pl.ds(off, chunk)] = y.astype(out_ref.dtype)
        return carry

    lax.fori_loop(0, num_chunks, chunk_body, 0, unroll=True)


def pinn_forward(t, z, theta, params, stats, *, tm=2048, compute_dtype=None):
    """Pallas forward pass of PINN. t, z, theta: (N, 1) float32. Returns (N, 1) float32.

    compute_dtype: dtype for the tanh/matmul-input chain. Defaults to bf16 on v6e/v7x
    (EUP/MXU are bf16-native) and f32 on older chips (v5e has no bf16 VPU/EUP).
    """
    if compute_dtype is None:
        kind = jax.devices()[0].device_kind.lower()
        old_chip = any(s in kind for s in ("v2", "v3", "v4", "v5"))
        compute_dtype = jnp.float32 if old_chip else jnp.bfloat16

    n = t.shape[0]
    w_in, b_in, w_h, b_h, w_out, b_out = params
    L, H = w_h.shape[0], w_h.shape[1]

    # Fold input normalization into the input layer (constant folding on weights):
    #   W (x - m)/s + b  ==  (W / s) x + (b - W @ (m/s))
    mean = jnp.array([stats["t_mean"], stats["z_mean"], stats["theta_mean"]], jnp.float32)
    std = jnp.array([stats["t_std"], stats["z_std"], stats["theta_std"]], jnp.float32)
    w_in_f = (w_in / std[None, :]).astype(jnp.float32)                  # (H, 3)
    b_in_f = (b_in - w_in @ (mean / std)[:, None]).astype(jnp.float32)  # (H, 1)

    w_h_c = w_h.astype(compute_dtype)                                   # (L, H, H)
    w_out_c = w_out.reshape(H, 1).T.astype(compute_dtype)               # (1, H)
    b_h_f = b_h.astype(jnp.float32)
    b_out_f = b_out.astype(jnp.float32)

    # Tile / padding selection: pad batch to a multiple of 128 lanes, clamp the tile for
    # small batches, and split into >=2 grid steps when free so both v7x TCs get work.
    tm = _round_up(max(int(tm), 128), 128)
    n128 = _round_up(max(n, 1), 128)
    tile = min(tm, n128)
    if tile == n128 and n128 >= 256 and n128 % 256 == 0:
        tile = n128 // 2
    n_pad = _round_up(n128, tile)
    chunk = 256 if tile % 256 == 0 else 128
    num_chunks = tile // chunk

    # Lane-dense packing: one (3, n_pad) input DMA per grid step.
    x = jnp.concatenate([t, z, theta], axis=1).T.astype(jnp.float32)    # (3, n)
    if n_pad != n:
        x = jnp.pad(x, ((0, 0), (0, n_pad - n)))

    kernel = functools.partial(
        _pinn_kernel,
        num_hidden_layers=L, chunk=chunk, num_chunks=num_chunks,
        compute_dtype=compute_dtype,
    )

    full = lambda shape: pl.BlockSpec(shape, lambda i: tuple(0 for _ in shape))

    out = pl.pallas_call(
        kernel,
        out_shape=jax.ShapeDtypeStruct((1, n_pad), jnp.float32),
        grid=(n_pad // tile,),
        in_specs=[
            pl.BlockSpec((3, tile), lambda i: (0, i)),   # packed [t; z; theta], lane-dense
            full((H, 3)),                                # w_in (normalization folded)
            full((H, 1)),                                # b_in
            full((L, H, H)),                             # w_hidden (compute dtype)
            full((L, H, 1)),                             # b_hidden
            full((1, H)),                                # w_out (row, compute dtype)
            full((1, 1)),                                # b_out
        ],
        out_specs=pl.BlockSpec((1, tile), lambda i: (0, i)),
        compiler_params=pltpu.CompilerParams(
            dimension_semantics=("parallel",)),          # shard grid steps across TCs
    )(x, w_in_f, b_in_f, w_h_c, b_h_f, w_out_c, b_out_f)

    return out[0, :n].reshape(n, 1)


def init_params(key, num_hidden_layers=4, num_neurons=64):
    """Xavier-normal weights, zero biases (matches PINN._init_weights), PyTorch (out,in) layout."""
    H, L = num_neurons, num_hidden_layers

    def xavier_normal(k, fan_out, fan_in):
        std = (2.0 / (fan_in + fan_out)) ** 0.5
        return std * jax.random.normal(k, (fan_out, fan_in), dtype=jnp.float32)

    keys = jax.random.split(key, L + 2)
    w_in = xavier_normal(keys[0], H, 3)                                     # (H, 3)
    b_in = jnp.zeros((H, 1), jnp.float32)
    w_h = jnp.stack([xavier_normal(keys[1 + l], H, H) for l in range(L)])   # (L, H, H)
    b_h = jnp.zeros((L, H, 1), jnp.float32)
    w_out = xavier_normal(keys[L + 1], 1, H).T                              # (H, 1)
    b_out = jnp.zeros((1, 1), jnp.float32)
    return (w_in, b_in, w_h, b_h, w_out, b_out)


def pinn_reference(t, z, theta, params, stats):
    """Pure-JAX f32 reference (batch-major, like the PyTorch module)."""
    w_in, b_in, w_h, b_h, w_out, b_out = params
    t_n = (t - stats["t_mean"]) / stats["t_std"]
    z_n = (z - stats["z_mean"]) / stats["z_std"]
    th_n = (theta - stats["theta_mean"]) / stats["theta_std"]
    x = jnp.concatenate([t_n, z_n, th_n], axis=1)            # (N, 3)
    h = jnp.tanh(x @ w_in.T + b_in.T)                        # (N, H)
    for l in range(w_h.shape[0]):
        h = jnp.tanh(h @ w_h[l].T + b_h[l].T)
    return h @ w_out + b_out                                 # (N, 1)


if __name__ == "__main__":
    key = jax.random.PRNGKey(0)
    k_param, k_data = jax.random.split(key, 2)

    L, H = 4, 64
    params = init_params(k_param, num_hidden_layers=L, num_neurons=H)
    stats = {
        "t_mean": 0.5, "t_std": 0.25,
        "z_mean": 0.0, "z_std": 1.0,
        "theta_mean": 1.0, "theta_std": 2.0,
    }

    # (batch, compute dtype, tolerance vs f32 reference)
    cases = (
        (1024, None, 5e-2),            # default dtype (bf16 on v6e/v7x), 2 grid steps
        (300, None, 5e-2),             # ragged batch -> padded to 384 lanes, 1 step
        (256, jnp.float32, 1e-3),      # f32 path (v5e-style), tight agreement
    )
    for N, dtype, tol in cases:
        k_t, k_z, k_th = jax.random.split(jax.random.fold_in(k_data, N), 3)
        t = jax.random.uniform(k_t, (N, 1), dtype=jnp.float32)
        z = jax.random.uniform(k_z, (N, 1), dtype=jnp.float32)
        theta = jax.random.uniform(k_th, (N, 1), dtype=jnp.float32) * 2.0

        out = pinn_forward(t, z, theta, params, stats, compute_dtype=dtype)
        out = jax.block_until_ready(out)

        ref = pinn_reference(t, z, theta, params, stats)
        assert out.shape == (N, 1)
        assert jnp.allclose(out, ref, atol=tol, rtol=tol), f"mismatch vs reference (N={N}, dtype={dtype})"

    print("KERNEL_OK")
</pallas_src>

<mosaic_0001>
module attributes {stable_mosaic.version = 11 : i64} {
  func.func @_pinn_kernel(%arg0: i32, %arg1: memref<3x512xf32, #tpu.memory_space<vmem>>, %arg2: memref<64x3xf32, #tpu.memory_space<vmem>>, %arg3: memref<64x1xf32, #tpu.memory_space<vmem>>, %arg4: memref<4x64x64xbf16, #tpu.memory_space<vmem>>, %arg5: memref<4x64x1xf32, #tpu.memory_space<vmem>>, %arg6: memref<1x64xbf16, #tpu.memory_space<vmem>>, %arg7: memref<1x1xf32, #tpu.memory_space<vmem>>, %arg8: memref<1x512xf32, #tpu.memory_space<vmem>>) attributes {dimension_semantics = [#tpu.dimension_semantics<parallel>], iteration_bounds = array<i64: 2>, scalar_prefetch = 0 : i64, scratch_operands = 0 : i64, tpu.core_type = #tpu.core_type<tc>, window_params = [{transform_indices = @transform_0, window_bounds = array<i64: 3, 512>}, {pipeline_mode = #tpu.pipeline_mode<synchronous>, transform_indices = @transform_1, window_bounds = array<i64: 64, 3>}, {pipeline_mode = #tpu.pipeline_mode<synchronous>, transform_indices = @transform_2, window_bounds = array<i64: 64, 1>}, {pipeline_mode = #tpu.pipeline_mode<synchronous>, transform_indices = @transform_3, window_bounds = array<i64: 4, 64, 64>}, {pipeline_mode = #tpu.pipeline_mode<synchronous>, transform_indices = @transform_4, window_bounds = array<i64: 4, 64, 1>}, {pipeline_mode = #tpu.pipeline_mode<synchronous>, transform_indices = @transform_5, window_bounds = array<i64: 1, 64>}, {pipeline_mode = #tpu.pipeline_mode<synchronous>, transform_indices = @transform_6, window_bounds = array<i64: 1, 1>}, {transform_indices = @transform_7, window_bounds = array<i64: 1, 512>}]} {
    %c0_i32 = arith.constant 0 : i32
    %c256_i32 = arith.constant 256 : i32
    %0 = arith.muli %c0_i32, %c256_i32 : i32
    %1 = tpu.assume_multiple %0, 256 : i32
    %c0 = arith.constant 0 : index
    %2 = arith.index_cast %1 : i32 to index
    %3 = vector.load %arg1[%c0, %2] : memref<3x512xf32, #tpu.memory_space<vmem>>, vector<1x256xf32>
    %c1 = arith.constant 1 : index
    %4 = arith.index_cast %1 : i32 to index
    %5 = vector.load %arg1[%c1, %4] : memref<3x512xf32, #tpu.memory_space<vmem>>, vector<1x256xf32>
    %c2 = arith.constant 2 : index
    %6 = arith.index_cast %1 : i32 to index
    %7 = vector.load %arg1[%c2, %6] : memref<3x512xf32, #tpu.memory_space<vmem>>, vector<1x256xf32>
    %c0_0 = arith.constant 0 : index
    %c0_1 = arith.constant 0 : index
    %8 = vector.load %arg2[%c0_0, %c0_1] : memref<64x3xf32, #tpu.memory_space<vmem>>, vector<64x1xf32>
    %9 = vector.broadcast %8 : vector<64x1xf32> to vector<64x256xf32>
    %10 = vector.broadcast %3 : vector<1x256xf32> to vector<64x256xf32>
    %11 = arith.mulf %9, %10 : vector<64x256xf32>
    %c0_2 = arith.constant 0 : index
    %c1_3 = arith.constant 1 : index
    %12 = vector.load %arg2[%c0_2, %c1_3] : memref<64x3xf32, #tpu.memory_space<vmem>>, vector<64x1xf32>
    %13 = vector.broadcast %12 : vector<64x1xf32> to vector<64x256xf32>
    %14 = vector.broadcast %5 : vector<1x256xf32> to vector<64x256xf32>
    %15 = arith.mulf %13, %14 : vector<64x256xf32>
    %16 = arith.addf %11, %15 : vector<64x256xf32>
    %c0_4 = arith.constant 0 : index
    %c2_5 = arith.constant 2 : index
    %17 = vector.load %arg2[%c0_4, %c2_5] : memref<64x3xf32, #tpu.memory_space<vmem>>, vector<64x1xf32>
    %18 = vector.broadcast %17 : vector<64x1xf32> to vector<64x256xf32>
    %19 = vector.broadcast %7 : vector<1x256xf32> to vector<64x256xf32>
    %20 = arith.mulf %18, %19 : vector<64x256xf32>
    %21 = arith.addf %16, %20 : vector<64x256xf32>
    %c0_6 = arith.constant 0 : index
    %c0_7 = arith.constant 0 : index
    %22 = vector.load %arg3[%c0_6, %c0_7] : memref<64x1xf32, #tpu.memory_space<vmem>>, vector<64x1xf32>
    %23 = vector.broadcast %22 : vector<64x1xf32> to vector<64x256xf32>
    %24 = arith.addf %21, %23 : vector<64x256xf32>
    %25 = arith.truncf %24 : vector<64x256xf32> to vector<64x256xbf16>
    %26 = math.tanh %25 : vector<64x256xbf16>
    %c0_8 = arith.constant 0 : index
    %c0_9 = arith.constant 0 : index
    %c0_10 = arith.constant 0 : index
    %27 = vector.load %arg4[%c0_8, %c0_9, %c0_10] : memref<4x64x64xbf16, #tpu.memory_space<vmem>>, vector<1x64x64xbf16>
    %28 = vector.shape_cast %27 : vector<1x64x64xbf16> to vector<64x64xbf16>
    %cst = arith.constant dense<0.000000e+00> : vector<64x256xf32>
    %29 = tpu.matmul %28, %26, %cst {dimension_numbers = #tpu.dot_dimension_numbers<[1], [0], [0], [1], [0, 0, 1, 1], [], []>} : vector<64x64xbf16>, vector<64x256xbf16>, vector<64x256xf32> -> vector<64x256xf32>
    %c0_11 = arith.constant 0 : index
    %c0_12 = arith.constant 0 : index
    %c0_13 = arith.constant 0 : index
    %30 = vector.load %arg5[%c0_11, %c0_12, %c0_13] : memref<4x64x1xf32, #tpu.memory_space<vmem>>, vector<1x64x1xf32>
    %31 = vector.shape_cast %30 : vector<1x64x1xf32> to vector<64x1xf32>
    %32 = vector.broadcast %31 : vector<64x1xf32> to vector<64x256xf32>
    %33 = arith.addf %29, %32 : vector<64x256xf32>
    %34 = arith.truncf %33 : vector<64x256xf32> to vector<64x256xbf16>
    %35 = math.tanh %34 : vector<64x256xbf16>
    %c1_14 = arith.constant 1 : index
    %c0_15 = arith.constant 0 : index
    %c0_16 = arith.constant 0 : index
    %36 = vector.load %arg4[%c1_14, %c0_15, %c0_16] : memref<4x64x64xbf16, #tpu.memory_space<vmem>>, vector<1x64x64xbf16>
    %37 = vector.shape_cast %36 : vector<1x64x64xbf16> to vector<64x64xbf16>
    %cst_17 = arith.constant dense<0.000000e+00> : vector<64x256xf32>
    %38 = tpu.matmul %37, %35, %cst_17 {dimension_numbers = #tpu.dot_dimension_numbers<[1], [0], [0], [1], [0, 0, 1, 1], [], []>} : vector<64x64xbf16>, vector<64x256xbf16>, vector<64x256xf32> -> vector<64x256xf32>
    %c1_18 = arith.constant 1 : index
    %c0_19 = arith.constant 0 : index
    %c0_20 = arith.constant 0 : index
    %39 = vector.load %arg5[%c1_18, %c0_19, %c0_20] : memref<4x64x1xf32, #tpu.memory_space<vmem>>, vector<1x64x1xf32>
    %40 = vector.shape_cast %39 : vector<1x64x1xf32> to vector<64x1xf32>
    %41 = vector.broadcast %40 : vector<64x1xf32> to vector<64x256xf32>
    %42 = arith.addf %38, %41 : vector<64x256xf32>
    %43 = arith.truncf %42 : vector<64x256xf32> to vector<64x256xbf16>
    %44 = math.tanh %43 : vector<64x256xbf16>
    %c2_21 = arith.constant 2 : index
    %c0_22 = arith.constant 0 : index
    %c0_23 = arith.constant 0 : index
    %45 = vector.load %arg4[%c2_21, %c0_22, %c0_23] : memref<4x64x64xbf16, #tpu.memory_space<vmem>>, vector<1x64x64xbf16>
    %46 = vector.shape_cast %45 : vector<1x64x64xbf16> to vector<64x64xbf16>
    %cst_24 = arith.constant dense<0.000000e+00> : vector<64x256xf32>
    %47 = tpu.matmul %46, %44, %cst_24 {dimension_numbers = #tpu.dot_dimension_numbers<[1], [0], [0], [1], [0, 0, 1, 1], [], []>} : vector<64x64xbf16>, vector<64x256xbf16>, vector<64x256xf32> -> vector<64x256xf32>
    %c2_25 = arith.constant 2 : index
    %c0_26 = arith.constant 0 : index
    %c0_27 = arith.constant 0 : index
    %48 = vector.load %arg5[%c2_25, %c0_26, %c0_27] : memref<4x64x1xf32, #tpu.memory_space<vmem>>, vector<1x64x1xf32>
    %49 = vector.shape_cast %48 : vector<1x64x1xf32> to vector<64x1xf32>
    %50 = vector.broadcast %49 : vector<64x1xf32> to vector<64x256xf32>
    %51 = arith.addf %47, %50 : vector<64x256xf32>
    %52 = arith.truncf %51 : vector<64x256xf32> to vector<64x256xbf16>
    %53 = math.tanh %52 : vector<64x256xbf16>
    %c3 = arith.constant 3 : index
    %c0_28 = arith.constant 0 : index
    %c0_29 = arith.constant 0 : index
    %54 = vector.load %arg4[%c3, %c0_28, %c0_29] : memref<4x64x64xbf16, #tpu.memory_space<vmem>>, vector<1x64x64xbf16>
    %55 = vector.shape_cast %54 : vector<1x64x64xbf16> to vector<64x64xbf16>
    %cst_30 = arith.constant dense<0.000000e+00> : vector<64x256xf32>
    %56 = tpu.matmul %55, %53, %cst_30 {dimension_numbers = #tpu.dot_dimension_numbers<[1], [0], [0], [1], [0, 0, 1, 1], [], []>} : vector<64x64xbf16>, vector<64x256xbf16>, vector<64x256xf32> -> vector<64x256xf32>
    %c3_31 = arith.constant 3 : index
    %c0_32 = arith.constant 0 : index
    %c0_33 = arith.constant 0 : index
    %57 = vector.load %arg5[%c3_31, %c0_32, %c0_33] : memref<4x64x1xf32, #tpu.memory_space<vmem>>, vector<1x64x1xf32>
    %58 = vector.shape_cast %57 : vector<1x64x1xf32> to vector<64x1xf32>
    %59 = vector.broadcast %58 : vector<64x1xf32> to vector<64x256xf32>
    %60 = arith.addf %56, %59 : vector<64x256xf32>
    %61 = arith.truncf %60 : vector<64x256xf32> to vector<64x256xbf16>
    %62 = math.tanh %61 : vector<64x256xbf16>
    %c0_34 = arith.constant 0 : index
    %c0_35 = arith.constant 0 : index
    %63 = vector.load %arg6[%c0_34, %c0_35] : memref<1x64xbf16, #tpu.memory_space<vmem>>, vector<1x64xbf16>
    %cst_36 = arith.constant dense<0.000000e+00> : vector<1x256xf32>
    %64 = tpu.matmul %63, %62, %cst_36 {dimension_numbers = #tpu.dot_dimension_numbers<[1], [0], [0], [1], [0, 0, 1, 1], [], []>} : vector<1x64xbf16>, vector<64x256xbf16>, vector<1x256xf32> -> vector<1x256xf32>
    %c0_37 = arith.constant 0 : index
    %c0_38 = arith.constant 0 : index
    %65 = vector.load %arg7[%c0_37, %c0_38] : memref<1x1xf32, #tpu.memory_space<vmem>>, vector<1x1xf32>
    %66 = vector.broadcast %65 : vector<1x1xf32> to vector<1x256xf32>
    %67 = arith.addf %64, %66 : vector<1x256xf32>
    %c0_39 = arith.constant 0 : index
    %68 = arith.index_cast %1 : i32 to index
    %69 = vector.load %arg8[%c0_39, %68] : memref<1x512xf32, #tpu.memory_space<vmem>>, vector<1x256xf32>
    tpu.vector_store %arg8[%c0_39, %68], %67 {strides = array<i32>} : memref<1x512xf32, #tpu.memory_space<vmem>>, vector<1x256xf32>,
    %c1_i32 = arith.constant 1 : i32
    %c256_i32_40 = arith.constant 256 : i32
    %70 = arith.muli %c1_i32, %c256_i32_40 : i32
    %71 = tpu.assume_multiple %70, 256 : i32
    %c0_41 = arith.constant 0 : index
    %72 = arith.index_cast %71 : i32 to index
    %73 = vector.load %arg1[%c0_41, %72] : memref<3x512xf32, #tpu.memory_space<vmem>>, vector<1x256xf32>
    %c1_42 = arith.constant 1 : index
    %74 = arith.index_cast %71 : i32 to index
    %75 = vector.load %arg1[%c1_42, %74] : memref<3x512xf32, #tpu.memory_space<vmem>>, vector<1x256xf32>
    %c2_43 = arith.constant 2 : index
    %76 = arith.index_cast %71 : i32 to index
    %77 = vector.load %arg1[%c2_43, %76] : memref<3x512xf32, #tpu.memory_space<vmem>>, vector<1x256xf32>
    %c0_44 = arith.constant 0 : index
    %c0_45 = arith.constant 0 : index
    %78 = vector.load %arg2[%c0_44, %c0_45] : memref<64x3xf32, #tpu.memory_space<vmem>>, vector<64x1xf32>
    %79 = vector.broadcast %78 : vector<64x1xf32> to vector<64x256xf32>
    %80 = vector.broadcast %73 : vector<1x256xf32> to vector<64x256xf32>
    %81 = arith.mulf %79, %80 : vector<64x256xf32>
    %c0_46 = arith.constant 0 : index
    %c1_47 = arith.constant 1 : index
    %82 = vector.load %arg2[%c0_46, %c1_47] : memref<64x3xf32, #tpu.memory_space<vmem>>, vector<64x1xf32>
    %83 = vector.broadcast %82 : vector<64x1xf32> to vector<64x256xf32>
    %84 = vector.broadcast %75 : vector<1x256xf32> to vector<64x256xf32>
    %85 = arith.mulf %83, %84 : vector<64x256xf32>
    %86 = arith.addf %81, %85 : vector<64x256xf32>
    %c0_48 = arith.constant 0 : index
    %c2_49 = arith.constant 2 : index
    %87 = vector.load %arg2[%c0_48, %c2_49] : memref<64x3xf32, #tpu.memory_space<vmem>>, vector<64x1xf32>
    %88 = vector.broadcast %87 : vector<64x1xf32> to vector<64x256xf32>
    %89 = vector.broadcast %77 : vector<1x256xf32> to vector<64x256xf32>
    %90 = arith.mulf %88, %89 : vector<64x256xf32>
    %91 = arith.addf %86, %90 : vector<64x256xf32>
    %c0_50 = arith.constant 0 : index
    %c0_51 = arith.constant 0 : index
    %92 = vector.load %arg3[%c0_50, %c0_51] : memref<64x1xf32, #tpu.memory_space<vmem>>, vector<64x1xf32>
    %93 = vector.broadcast %92 : vector<64x1xf32> to vector<64x256xf32>
    %94 = arith.addf %91, %93 : vector<64x256xf32>
    %95 = arith.truncf %94 : vector<64x256xf32> to vector<64x256xbf16>
    %96 = math.tanh %95 : vector<64x256xbf16>
    %c0_52 = arith.constant 0 : index
    %c0_53 = arith.constant 0 : index
    %c0_54 = arith.constant 0 : index
    %97 = vector.load %arg4[%c0_52, %c0_53, %c0_54] : memref<4x64x64xbf16, #tpu.memory_space<vmem>>, vector<1x64x64xbf16>
    %98 = vector.shape_cast %97 : vector<1x64x64xbf16> to vector<64x64xbf16>
    %cst_55 = arith.constant dense<0.000000e+00> : vector<64x256xf32>
    %99 = tpu.matmul %98, %96, %cst_55 {dimension_numbers = #tpu.dot_dimension_numbers<[1], [0], [0], [1], [0, 0, 1, 1], [], []>} : vector<64x64xbf16>, vector<64x256xbf16>, vector<64x256xf32> -> vector<64x256xf32>
    %c0_56 = arith.constant 0 : index
    %c0_57 = arith.constant 0 : index
    %c0_58 = arith.constant 0 : index
    %100 = vector.load %arg5[%c0_56, %c0_57, %c0_58] : memref<4x64x1xf32, #tpu.memory_space<vmem>>, vector<1x64x1xf32>
    %101 = vector.shape_cast %100 : vector<1x64x1xf32> to vector<64x1xf32>
    %102 = vector.broadcast %101 : vector<64x1xf32> to vector<64x256xf32>
    %103 = arith.addf %99, %102 : vector<64x256xf32>
    %104 = arith.truncf %103 : vector<64x256xf32> to vector<64x256xbf16>
    %105 = math.tanh %104 : vector<64x256xbf16>
    %c1_59 = arith.constant 1 : index
    %c0_60 = arith.constant 0 : index
    %c0_61 = arith.constant 0 : index
    %106 = vector.load %arg4[%c1_59, %c0_60, %c0_61] : memref<4x64x64xbf16, #tpu.memory_space<vmem>>, vector<1x64x64xbf16>
    %107 = vector.shape_cast %106 : vector<1x64x64xbf16> to vector<64x64xbf16>
    %cst_62 = arith.constant dense<0.000000e+00> : vector<64x256xf32>
    %108 = tpu.matmul %107, %105, %cst_62 {dimension_numbers = #tpu.dot_dimension_numbers<[1], [0], [0], [1], [0, 0, 1, 1], [], []>} : vector<64x64xbf16>, vector<64x256xbf16>, vector<64x256xf32> -> vector<64x256xf32>
    %c1_63 = arith.constant 1 : index
    %c0_64 = arith.constant 0 : index
    %c0_65 = arith.constant 0 : index
    %109 = vector.load %arg5[%c1_63, %c0_64, %c0_65] : memref<4x64x1xf32, #tpu.memory_space<vmem>>, vector<1x64x1xf32>
    %110 = vector.shape_cast %109 : vector<1x64x1xf32> to vector<64x1xf32>
    %111 = vector.broadcast %110 : vector<64x1xf32> to vector<64x256xf32>
    %112 = arith.addf %108, %111 : vector<64x256xf32>
    %113 = arith.truncf %112 : vector<64x256xf32> to vector<64x256xbf16>
    %114 = math.tanh %113 : vector<64x256xbf16>
    %c2_66 = arith.constant 2 : index
    %c0_67 = arith.constant 0 : index
    %c0_68 = arith.constant 0 : index
    %115 = vector.load %arg4[%c2_66, %c0_67, %c0_68] : memref<4x64x64xbf16, #tpu.memory_space<vmem>>, vector<1x64x64xbf16>
    %116 = vector.shape_cast %115 : vector<1x64x64xbf16> to vector<64x64xbf16>
    %cst_69 = arith.constant dense<0.000000e+00> : vector<64x256xf32>
    %117 = tpu.matmul %116, %114, %cst_69 {dimension_numbers = #tpu.dot_dimension_numbers<[1], [0], [0], [1], [0, 0, 1, 1], [], []>} : vector<64x64xbf16>, vector<64x256xbf16>, vector<64x256xf32> -> vector<64x256xf32>
    %c2_70 = arith.constant 2 : index
    %c0_71 = arith.constant 0 : index
    %c0_72 = arith.constant 0 : index
    %118 = vector.load %arg5[%c2_70, %c0_71, %c0_72] : memref<4x64x1xf32, #tpu.memory_space<vmem>>, vector<1x64x1xf32>
    %119 = vector.shape_cast %118 : vector<1x64x1xf32> to vector<64x1xf32>
    %120 = vector.broadcast %119 : vector<64x1xf32> to vector<64x256xf32>
    %121 = arith.addf %117, %120 : vector<64x256xf32>
    %122 = arith.truncf %121 : vector<64x256xf32> to vector<64x256xbf16>
    %123 = math.tanh %122 : vector<64x256xbf16>
    %c3_73 = arith.constant 3 : index
    %c0_74 = arith.constant 0 : index
    %c0_75 = arith.constant 0 : index
    %124 = vector.load %arg4[%c3_73, %c0_74, %c0_75] : memref<4x64x64xbf16, #tpu.memory_space<vmem>>, vector<1x64x64xbf16>
    %125 = vector.shape_cast %124 : vector<1x64x64xbf16> to vector<64x64xbf16>
    %cst_76 = arith.constant dense<0.000000e+00> : vector<64x256xf32>
    %126 = tpu.matmul %125, %123, %cst_76 {dimension_numbers = #tpu.dot_dimension_numbers<[1], [0], [0], [1], [0, 0, 1, 1], [], []>} : vector<64x64xbf16>, vector<64x256xbf16>, vector<64x256xf32> -> vector<64x256xf32>
    %c3_77 = arith.constant 3 : index
    %c0_78 = arith.constant 0 : index
    %c0_79 = arith.constant 0 : index
    %127 = vector.load %arg5[%c3_77, %c0_78, %c0_79] : memref<4x64x1xf32, #tpu.memory_space<vmem>>, vector<1x64x1xf32>
    %128 = vector.shape_cast %127 : vector<1x64x1xf32> to vector<64x1xf32>
    %129 = vector.broadcast %128 : vector<64x1xf32> to vector<64x256xf32>
    %130 = arith.addf %126, %129 : vector<64x256xf32>
    %131 = arith.truncf %130 : vector<64x256xf32> to vector<64x256xbf16>
    %132 = math.tanh %131 : vector<64x256xbf16>
    %c0_80 = arith.constant 0 : index
    %c0_81 = arith.constant 0 : index
    %133 = vector.load %arg6[%c0_80, %c0_81] : memref<1x64xbf16, #tpu.memory_space<vmem>>, vector<1x64xbf16>
    %cst_82 = arith.constant dense<0.000000e+00> : vector<1x256xf32>
    %134 = tpu.matmul %133, %132, %cst_82 {dimension_numbers = #tpu.dot_dimension_numbers<[1], [0], [0], [1], [0, 0, 1, 1], [], []>} : vector<1x64xbf16>, vector<64x256xbf16>, vector<1x256xf32> -> vector<1x256xf32>
    %c0_83 = arith.constant 0 : index
    %c0_84 = arith.constant 0 : index
    %135 = vector.load %arg7[%c0_83, %c0_84] : memref<1x1xf32, #tpu.memory_space<vmem>>, vector<1x1xf32>
    %136 = vector.broadcast %135 : vector<1x1xf32> to vector<1x256xf32>
    %137 = arith.addf %134, %136 : vector<1x256xf32>
    %c0_85 = arith.constant 0 : index
    %138 = arith.index_cast %71 : i32 to index
    %139 = vector.load %arg8[%c0_85, %138] : memref<1x512xf32, #tpu.memory_space<vmem>>, vector<1x256xf32>
    tpu.vector_store %arg8[%c0_85, %138], %137 {strides = array<i32>} : memref<1x512xf32, #tpu.memory_space<vmem>>, vector<1x256xf32>,
    %c2_i32 = arith.constant 2 : i32
    return
  }
  func.func @transform_0(%arg0: i32) -> (i32, i32) {
    %c0_i32 = arith.constant 0 : i32
    %c0_i32_0 = arith.constant 0 : i32
    return %c0_i32, %arg0 : i32, i32
  }
  func.func @transform_1(%arg0: i32) -> (i32, i32) {
    %c0_i32 = arith.constant 0 : i32
    %c0_i32_0 = arith.constant 0 : i32
    %c0_i32_1 = arith.constant 0 : i32
    return %c0_i32, %c0_i32_0 : i32, i32
  }
  func.func @transform_2(%arg0: i32) -> (i32, i32) {
    %c0_i32 = arith.constant 0 : i32
    %c0_i32_0 = arith.constant 0 : i32
    %c0_i32_1 = arith.constant 0 : i32
    return %c0_i32, %c0_i32_0 : i32, i32
  }
  func.func @transform_3(%arg0: i32) -> (i32, i32, i32) {
    %c0_i32 = arith.constant 0 : i32
    %c0_i32_0 = arith.constant 0 : i32
    %c0_i32_1 = arith.constant 0 : i32
    %c0_i32_2 = arith.constant 0 : i32
    return %c0_i32, %c0_i32_0, %c0_i32_1 : i32, i32, i32
  }
  func.func @transform_4(%arg0: i32) -> (i32, i32, i32) {
    %c0_i32 = arith.constant 0 : i32
    %c0_i32_0 = arith.constant 0 : i32
    %c0_i32_1 = arith.constant 0 : i32
    %c0_i32_2 = arith.constant 0 : i32
    return %c0_i32, %c0_i32_0, %c0_i32_1 : i32, i32, i32
  }
  func.func @transform_5(%arg0: i32) -> (i32, i32) {
    %c0_i32 = arith.constant 0 : i32
    %c0_i32_0 = arith.constant 0 : i32
    %c0_i32_1 = arith.constant 0 : i32
    return %c0_i32, %c0_i32_0 : i32, i32
  }
  func.func @transform_6(%arg0: i32) -> (i32, i32) {
    %c0_i32 = arith.constant 0 : i32
    %c0_i32_0 = arith.constant 0 : i32
    %c0_i32_1 = arith.constant 0 : i32
    return %c0_i32, %c0_i32_0 : i32, i32
  }
  func.func @transform_7(%arg0: i32) -> (i32, i32) {
    %c0_i32 = arith.constant 0 : i32
    %c0_i32_0 = arith.constant 0 : i32
    return %c0_i32, %arg0 : i32, i32
  }
}

</mosaic_0001>

<bundles_post_ra>
// kernel: tpu_custom_call.1
= control target key start
LH: loop header
LB: loop body
LE: loop exit
PB: predicated region body
PF: predicated region fallthrough
CT: control target
= control target key end

     0   :  { %s4567_s0 = inlined_call_operand.vmem [shape: f32[3,1024], index: 0, kind: input, shape index: {}]   ;;  %s4568_s1 = inlined_call_operand.vmem [shape: f32[64,3], index: 1, kind: input, shape index: {}]   ;;  %s4569_s2 = inlined_call_operand.vmem [shape: f32[64,1], index: 2, kind: input, shape index: {}]   ;;  %s4570_s3 = inlined_call_operand.vmem [shape: bf16[4,64,64], index: 3, kind: input, shape index: {}]   ;;  %s4571_s4 = inlined_call_operand.vmem [shape: f32[4,64,1], index: 4, kind: input, shape index: {}]   ;;  %s4572_s5 = inlined_call_operand.vmem [shape: bf16[1,64], index: 5, kind: input, shape index: {}]   ;;  %s4573_s6 = inlined_call_operand.<no memory space> [shape: f32[1,1], index: 6, kind: input, shape index: {}]   ;;  %s4574_s7 = inlined_call_operand.hbm [shape: f32[1,1024], index: 7, kind: output, shape index: {}]  }
   0x1   :  { %v12_v0 = vstv %s4573_s6 }
   0x2   :  { %13 = vst [vmem:[#allocation2] sm:$0x1] %v12_v0 }
   0x3   :  { %14 = vsyncpa [#allocation4], 0 }
   0x4   :  { %16 = vsyncpa [#allocation4 + $0x1], 0  ;;  %s3518_s26 = smov 0   ;;  %s3520_s27 = smov 0  }
   0x5   :  { %s3522_s28 = smov 0   ;;  %s3524_s29 = smov 0  }
   0x6 LB: > { %s2659_s6 = sadd.s32 4294967295, %s3470_s29   ;;  %s2660_s30 = sadd.s32 4294967294, %s3470_s29   ;;  %s3470_s29 = sphi %s3524_s29, %s4588_s29   ;;  %s3466_s28 = sphi %s3522_s28, %s4587_s28   ;;  %s3462_s27 = sphi %s3520_s27, %s4586_s27   ;;  %s3458_s26 = sphi %s3518_s26, %s4585_s26  }
   0x7   : > { %s3541_s8 = sadd.s32 1, %s3470_s29   ;;  %s181_s9 = sadd.s32 1, %s3466_s28 }
   0x8   : > { %s178_s10 = ssub.s32 %s3470_s29, %s3541_s8  ;;  %p191_p0 = scmp.ne.s32.totalorder %s3466_s28, %s3462_s27 }
   0x9   : > { %p179_p1 = scmp.eq.s32.totalorder %s178_s10, 0  ;;  %p192_p2 = scmp.eq.s32.totalorder %s2659_s6, 1 }
   0xa   : > { %p197_p3 = scmp.ne.s32.totalorder %s3462_s27, %s3458_s26  ;;  %p198_p4 = scmp.eq.s32.totalorder %s2660_s30, 1 }
   0xb   : > { %s3553_s11 = scalar_select %p179_p1, %s3466_s28, %s181_s9  }
   0xc   : > { %p3555_p5 = por %p192_p2, %p191_p0  ;;  %p3559_p6 = por %p198_p4, %p197_p3 }
   0xd   : > { %p2663_p7 = scmp.ge.s32.totalorder %s3470_s29, 1  ;;  %p243_p8 = scmp.lt.s32.totalorder %s3470_s29, 3 }
   0xf   : > { %p244_p9 = pnand %p2663_p7, %p243_p8 }
  0x10   : > { %s3719_s14 = sshll.u32 (!%p244_p9), %s2659_s6, 2  ;;  %s3428_s25 = scalar_lea.hbm (!%p244_p9), %s4574_s7, 8 }
  0x11   : > { %247 = sbr.rel (%p244_p9) target bundleno = 1971 (0x7b3), region = 48  ;;  %p276_p10 = scmp.lt.s32.totalorder (!%p244_p9), %s3719_s14, 7 }
  0x12   : > { %s2594_s18 = scalar_lea.hbm (!%p244_p9), %s4574_s7, %s3719_s14 }
  0x16   : > { %v3568_v1 = vld [vmem:[%s4568_s1 + $0x30] sm:$0xff]  ;;  %v291_v2 = vld [vmem:[%s4568_s1 + $0x18] sm:$0xff]  ;;  %v4575_v3 = vmov 2   ;;  %v4577_v4 = vmov 1   ;;  %v3586_v6 = vld [vmem:[%s4568_s1 + $0x28] sm:$0xff]  ;;  %v3474_v9 = vmov 0  }
  0x17   : > { %3054 = vset.pattern.permute.xlu0 %v4575_v3  ;;  %3044 = vset.pattern.permute.xlu2 %v4575_v3  ;;  %v3581_v5 = vld [vmem:[%s4568_s1 + $0x38] sm:$0xff]  ;;  %v3595_v7 = vld [vmem:[%s4568_s1 + $0x20] sm:$0xff]  ;;  %v3613_v10 = vld [vmem:[%s4569_s2 + $0x30] sm:$0xff]  ;;  %s277_s6 = scalar_select %p276_p10, %s3719_s14, 7  ;;  %vm683_vm0 = vcmask 523264   ;;  %vm1430_vm1 = vcmask 1040384  }
  0x18   : > { %3043 = vset.pattern.permute.xlu1 %v4577_v4  ;;  %451 = vperm.xlu2 %3044, %v3568_v1   ;;  %v288_v8 = vld [vmem:[%s4568_s1] sm:$0xff]  ;;  %v3618_v11 = vld [vmem:[%s4569_s2 + $0x38] sm:$0xff]  ;;  %v3628_v12 = vld [vmem:[%s4568_s1 + $0x10] sm:$0xff] }
  0x19   : > { %382 = vperm.xlu1 %3043, %v3568_v1   ;;  %439 = vperm.xlu0 %3054, %v291_v2   ;;  %v498_v13 = vld [vmem:[%s4569_s2 + $0x18] sm:$0xff]  ;;  %v499_v14 = vld [vmem:[%s4569_s2 + $0x20] sm:$0xff]  ;;  %v500_v15 = vld [vmem:[%s4569_s2 + $0x28] sm:$0xff]  ;;  %s2666_s21 = sshll.u32 %s277_s6, 2  ;;  %s2598_s6 = sshll.u32 %s2594_s18, 4  ;;  %s2599_s6 = int_to_ptr.hbm [resolvable:$true] %s2598_s6 }
  0x1a   : > { %v619_v16 = vld [vmem:[%s4571_s4 + $0x20] sm:$0xff]  ;;  %v289_v17 = vld [vmem:[%s4568_s1 + $0x8] sm:$0xff]  ;;  %v618_v18 = vld [vmem:[%s4571_s4 + $0x18] sm:$0xff]  ;;  %s3750_s30 = scalar_lea.vmem %s4567_s0, %s2666_s21  ;;  %s272_s21 = sand.u32 1, %s3462_s27  }
  0x1b   : > { %v2707_v19 = vld [vmem:[%s4571_s4 + $0x70] sm:$0xff]  ;;  %v2706_v21 = vld [vmem:[%s4571_s4 + $0x68] sm:$0xff]  ;;  %v495_v23 = vld [vmem:[%s4569_s2] sm:$0xff]  ;;  %s2664_s22 = sshll.u32 %s272_s21, 2  ;;  %s2584_s19 = scalar_lea.sflag [#allocation4], %s272_s21 }
  0x1c   : > { %v497_v20 = vld [vmem:[%s4569_s2 + $0x10] sm:$0xff]  ;;  %v496_v24 = vld [vmem:[%s4569_s2 + $0x8] sm:$0xff]  ;;  %v2701_v25 = vld [vmem:[%s4571_s4 + $0x40] sm:$0xff]  ;;  %s4463_s23 = scalar_lea.vmem [#allocation3], %s2664_s22  ;;  %s3422_s20 = sshra.s32 %s2599_s6, 4  ;;  %s3423_s20 = int_to_ptr.hbm [resolvable:$true] %s3422_s20 }
  0x1d   : > { %v621_v27 = vld [vmem:[%s4571_s4 + $0x30] sm:$0xff]  ;;  %v622_v28 = vld [vmem:[%s4571_s4 + $0x38] sm:$0xff]  ;;  %v620_v31 = vld [vmem:[%s4571_s4 + $0x28] sm:$0xff]  ;;  %s3424_s14 = scalar_lea.hbm %s3423_s20, 4  ;;  %p3429_p0 = scmp.lt.s32.totalorder %s3423_s20, %s4574_s7 }
  0x1e   : > { %v2748_v29 = vld [vmem:[%s4571_s4 + $0xb8] sm:$0xff]  ;;  %v617_v32 = vld [vmem:[%s4571_s4 + $0x10] sm:$0xff]  ;;  %v615_v37 = vld [vmem:[%s4571_s4] sm:$0xff]  ;;  %p3425_p11 = scmp.ne.s32.totalorder %s3423_s20, %s3424_s14  ;;  %p3430_p1 = scmp.lt.s32.totalorder %s3428_s25, %s3424_s14 }
  0x1f   : > { %v2743_v33 = vld [vmem:[%s4571_s4 + $0x90] sm:$0xff]  ;;  %v616_v38 = vld [vmem:[%s4571_s4 + $0x8] sm:$0xff]  ;;  %v2708_v42 = vld [vmem:[%s4571_s4 + $0x78] sm:$0xff] }
  0x20   : > { %455 = vperm.xlu2 %3044, %v3581_v5   ;;  %v2742_v39 = vld [vmem:[%s4571_s4 + $0x88] sm:$0xff]  ;;  %v2705_v44 = vld [vmem:[%s4571_s4 + $0x60] sm:$0xff]  ;;  %v2703_v47 = vld [vmem:[%s4571_s4 + $0x50] sm:$0xff]  ;;  %p3426_p12 = pnand %p3425_p11, %p3555_p5  ;;  %p3431_p2 = por %p3430_p1, %p3429_p0 }
  0x21   : > { %386 = vperm.xlu1 %3043, %v3581_v5   ;;  %3055 = vset.pattern.permute.xlu0 %v4577_v4  ;;  %v2704_v48 = vld [vmem:[%s4571_s4 + $0x58] sm:$0xff]  ;;  %v2667_v50 = vld [vmem:[%s3750_s30 + $0x1] ss:$4 sm:$0x3]  ;;  %v2702_v54 = vld [vmem:[%s4571_s4 + $0x48] sm:$0xff] }
  0x22   : > { %378 = vperm.xlu0 %3055, %v3586_v6   ;;  %v283_v52 = vld [vmem:[%s3750_s30] ss:$4 sm:$0x3]  ;;  %v2747_v55 = vld [vmem:[%s4571_s4 + $0xb0] sm:$0xff]  ;;  %v3765_v57 = vperm.slane %v2667_v50, 0  ;;  %v3767_v58 = vperm.slane %v2667_v50, 1  ;;  %p3427_p13 = pneg %p3426_p12 }
  0x23   : > { %v2668_v56 = vld [vmem:[%s3750_s30 + $0x2] ss:$4 sm:$0x3]  ;;  %v3769_v59 = vperm.slane %v283_v52, 0  ;;  %v3771_v60 = vperm.slane %v283_v52, 1 }
  0x24   : > { %v3777_v0 = vperm.slane %v2668_v56, 0  ;;  %p3432_p3 = pnand %p3431_p2, %p3427_p13 }
  0x28   : > { %3046 = vset.pattern.permute.xlu2 %v4577_v4 }
  0x29   : > { %3045 = vset.pattern.permute.xlu1 %v3474_v9  ;;  %374 = vperm.xlu2 %3046, %v3595_v7  }
  0x2a   : > { %323 = vperm.xlu1 %3045, %v3586_v6   ;;  %358 = vperm.xlu0 %3055, %v288_v8  }
  0x31   : > { %3048 = vset.pattern.permute.xlu2 %v4575_v3 }
  0x32   : > { %3047 = vset.pattern.permute.xlu1 %v4575_v3  ;;  %3058 = vset.pattern.permute.xlu0 %v3474_v9 }
  0x33   : > { %443 = vperm.xlu1 %3047, %v3595_v7   ;;  %447 = vperm.xlu2 %3048, %v3586_v6  }
  0x34   : > { %328 = vperm.xlu0 %3058, %v3568_v1  }
  0x3b   : > { %3049 = vset.pattern.permute.xlu1 %v3474_v9  ;;  %3050 = vset.pattern.permute.xlu2 %v3474_v9 }
  0x3c   : > { %333 = vperm.xlu0 %3058, %v3581_v5   ;;  %535 = vperm.xlu1 %3049, %v3613_v10  }
  0x3d   : > { %540 = vperm.xlu2 %3050, %v3618_v11  }
  0x44   : > { %318 = vperm.xlu0 %3058, %v3595_v7   ;;  %313 = vperm.xlu1 %3049, %v291_v2  }
  0x45   : > { %3051 = vset.pattern.permute.xlu2 %v4577_v4 }
  0x46   : > { %366 = vperm.xlu2 %3051, %v3628_v12  }
  0x4c   : > { %308 = vperm.xlu0 %3058, %v3628_v12   ;;  %3052 = vset.pattern.permute.xlu1 %v4577_v4 }
  0x4d   : > { %370 = vperm.xlu1 %3052, %v291_v2   ;;  %v3779_v2 = vperm.slane %v2668_v56, 1 }
  0x4e   : > { %3053 = vset.pattern.permute.xlu2 %v4575_v3 }
  0x4f   : > { %435 = vperm.xlu2 %3053, %v3628_v12  }
  0x54   : > { %520 = vperm.xlu0 %3058, %v498_v13  }
  0x55   : > { %3056 = vset.pattern.permute.xlu1 %v3474_v9 }
  0x56   : > { %525 = vperm.xlu1 %3056, %v499_v14  }
  0x57   : > { %3057 = vset.pattern.permute.xlu2 %v3474_v9 }
  0x58   : > { %530 = vperm.xlu2 %3057, %v500_v15  }
  0x5c   : > { %645 = vperm.xlu0 %3058, %v619_v16  }
  0x5e   : > { %298 = vperm.xlu1 %3056, %v288_v8  }
  0x60   : > { %303 = vperm.xlu2 %3057, %v289_v17  }
  0x64   : > { %640 = vperm.xlu0 %3058, %v618_v18   ;;  %v2745_v18 = vld [vmem:[%s4571_s4 + $0xa0] sm:$0xff] }
  0x66   : > { %3059 = vset.pattern.permute.xlu1 %v4577_v4 }
  0x67   : > { %362 = vperm.xlu1 %3059, %v289_v17  }
  0x68   : > { %3060 = vset.pattern.permute.xlu2 %v4575_v3 }
  0x69   : > { %427 = vperm.xlu2 %3060, %v288_v8  }
  0x6c   : > { %852 = vperm.xlu0 %3058, %v2707_v19  }
  0x6f   : > { %3061 = vset.pattern.permute.xlu1 %v4575_v3 }
  0x70   : > { %431 = vperm.xlu1 %3061, %v289_v17  }
  0x71   : > { %3062 = vset.pattern.permute.xlu2 %v3474_v9 }
  0x72   : > { %515 = vperm.xlu2 %3062, %v497_v20   ;;  %v3670_v22 = vpop.permute.xlu2 %451 }
  0x74   : > { %847 = vperm.xlu0 %3058, %v2706_v21  }
  0x78   : > { %3063 = vset.pattern.permute.xlu1 %v3474_v9 }
  0x79   : > { %505 = vperm.xlu1 %3063, %v495_v23  }
  0x7a   : > { %510 = vperm.xlu2 %3062, %v496_v24   ;;  %v3682_v26 = vpop.permute.xlu2 %455  ;;  %v2746_v24 = vld [vmem:[%s4571_s4 + $0xa8] sm:$0xff] }
  0x7c   : > { %822 = vperm.xlu0 %3058, %v2701_v25   ;;  %v475_v25 = vmul.f32 %v3777_v0, %v3670_v22 }
  0x81   : > { %655 = vperm.xlu1 %3063, %v621_v27   ;;  %v476_v27 = vmul.f32 %v3779_v2, %v3670_v22 }
  0x82   : > { %660 = vperm.xlu2 %3062, %v622_v28   ;;  %v477_v28 = vmul.f32 %v3777_v0, %v3682_v26 }
  0x83   : > { %v3693_v30 = vpop.permute.xlu2 %374 }
  0x84   : > { %1053 = vperm.xlu0 %3058, %v2748_v29   ;;  %v478_v29 = vmul.f32 %v3779_v2, %v3682_v26  ;;  %v2744_v26 = vld [vmem:[%s4571_s4 + $0x98] sm:$0xff] }
  0x89   : > { %650 = vperm.xlu1 %3063, %v620_v31  }
  0x8a   : > { %635 = vperm.xlu2 %3062, %v617_v32  }
  0x8b   : > { %v383_v34 = vpop.permute.xlu1 %382  ;;  %v3704_v35 = vpop.permute.xlu0 %439 }
  0x8c   : > { %1028 = vperm.xlu0 %3058, %v2743_v33   ;;  %v406_v8 = vmul.f32 %v3765_v57, %v383_v34  ;;  %v407_v13 = vmul.f32 %v3767_v58, %v383_v34 }
  0x8d   : > { %v3706_v36 = vpop.permute.xlu2 %447 }
  0x91   : > { %625 = vperm.xlu1 %3063, %v615_v37  }
  0x92   : > { %630 = vperm.xlu2 %3062, %v616_v38  }
  0x93   : > { %v387_v40 = vpop.permute.xlu1 %386 }
  0x94   : > { %1023 = vperm.xlu0 %3058, %v2742_v39   ;;  %v3721_v41 = vpop.permute.xlu0 %378  ;;  %v408_v14 = vmul.f32 %v3765_v57, %v387_v40  ;;  %v409_v15 = vmul.f32 %v3767_v58, %v387_v40 }
  0x97   : > { %v3727_v43 = vpop.permute.xlu2 %540 }
  0x99   : > { %857 = vperm.xlu1 %3063, %v2708_v42  }
  0x9a   : > { %842 = vperm.xlu2 %3062, %v2705_v44  }
  0x9c   : > { %v3733_v45 = vpop.permute.xlu1 %323  ;;  %v3735_v46 = vpop.permute.xlu0 %358  ;;  %3064 = vset.pattern.permute.xlu0 %v4577_v4 }
  0x9d   : > { %1538 = vperm.xlu0 %3064, %v3568_v1  }
  0xa0   : > { %v3745_v49 = vpop.permute.xlu2 %366 }
  0xa1   : > { %832 = vperm.xlu1 %3063, %v2703_v47  }
  0xa2   : > { %837 = vperm.xlu2 %3062, %v2704_v48  }
  0xa5   : > { %v3753_v51 = vpop.permute.xlu1 %443  ;;  %3077 = vset.pattern.permute.xlu0 %v4575_v3 }
  0xa6   : > { %v329_v53 = vpop.permute.xlu0 %328  ;;  %1591 = vperm.xlu0 %3077, %v3628_v12  }
  0xa7   : > { %v353_v62 = vmul.f32 %v3769_v59, %v329_v53  ;;  %v354_v63 = vmul.f32 %v3771_v60, %v329_v53  ;;  %v2741_v53 = vld [vmem:[%s4571_s4 + $0x80] sm:$0xff] }
  0xa9   : > { %v3773_v61 = vpop.permute.xlu2 %435  ;;  %827 = vperm.xlu1 %3063, %v2702_v54   ;;  %v422_v19 = vadd.f32 %v406_v8, %v353_v62  ;;  %v423_v20 = vadd.f32 %v407_v13, %v354_v63  ;;  %v404_v63 = vmul.f32 %v3765_v57, %v3721_v41  ;;  %v351_v8 = vmul.f32 %v3769_v59, %v3733_v45 }
  0xaa   : > { %1048 = vperm.xlu2 %3062, %v2747_v55   ;;  %v352_v13 = vmul.f32 %v3771_v60, %v3733_v45 }
  0xab   : > { %v491_v38 = vadd.f32 %v475_v25, %v422_v19  ;;  %v492_v39 = vadd.f32 %v476_v27, %v423_v20  ;;  %v403_v20 = vmul.f32 %v3767_v58, %v3693_v30  ;;  %v474_v25 = vmul.f32 %v3779_v2, %v3706_v36 }
  0xac   : > { %v420_v27 = vadd.f32 %v404_v63, %v351_v8 }
  0xae   : > { %v334_v16 = vpop.permute.xlu0 %333  ;;  %v536_v17 = vpop.permute.xlu1 %535  ;;  %3078 = vset.pattern.permute.xlu0 %v3474_v9 }
  0xaf   : > { %v355_v21 = vmul.f32 %v3769_v59, %v334_v16  ;;  %v356_v23 = vmul.f32 %v3771_v60, %v334_v16  ;;  %1479 = vperm.xlu0 %3078, %v3586_v6   ;;  %v555_v40 = vadd.f32 %v536_v17, %v491_v38  ;;  %v556_v42 = vadd.f32 %v536_v17, %v492_v39 }
  0xb0   : > { %v402_v17 = vmul.f32 %v3765_v57, %v3693_v30 }
  0xb1   : > { %v424_v31 = vadd.f32 %v408_v14, %v355_v21  ;;  %v425_v32 = vadd.f32 %v409_v15, %v356_v23  ;;  %1038 = vperm.xlu1 %3063, %v2745_v18   ;;  %v469_v21 = vmul.f32 %v3777_v0, %v3704_v35 }
  0xb2   : > { %v3803_v33 = vpop.permute.xlu2 %530  ;;  %1043 = vperm.xlu2 %3062, %v2746_v24   ;;  %v473_v24 = vmul.f32 %v3777_v0, %v3706_v36 }
  0xb3   : > { %v493_v34 = vadd.f32 %v477_v28, %v424_v31  ;;  %v494_v37 = vadd.f32 %v478_v29, %v425_v32 }
  0xb5   : > { %v557_v22 = vadd.f32 %v3727_v43, %v493_v34  ;;  %v558_v44 = vadd.f32 %v3727_v43, %v494_v37 }
  0xb6   : > { %v319_v47 = vpop.permute.xlu0 %318  ;;  %v314_v48 = vpop.permute.xlu1 %313 }
  0xb7   : > { %v565_v50 = vpack.c.bf16 %v557_v22, %v555_v40  ;;  %v566_v52 = vpack.c.bf16 %v558_v44, %v556_v42  ;;  %1691 = vperm.xlu0 %3078, %v3613_v10   ;;  %v405_v10 = vmul.f32 %v3767_v58, %v3721_v41  ;;  %v349_v14 = vmul.f32 %v3769_v59, %v319_v47 }
  0xb8   : > { %v350_v15 = vmul.f32 %v3771_v60, %v319_v47  ;;  %v470_v41 = vmul.f32 %v3779_v2, %v3704_v35  ;;  %v347_v32 = vmul.f32 %v3769_v59, %v314_v48  ;;  %v348_v38 = vmul.f32 %v3771_v60, %v314_v48 }
  0xb9   : > { %v579_v54 = vunpack.c.l.bf16 %v565_v50  ;;  %v580_v55 = vunpack.c.l.bf16 %v566_v52  ;;  %v581_v56 = vunpack.c.h.bf16 %v565_v50  ;;  %1033 = vperm.xlu1 %3063, %v2744_v26   ;;  %v582_v62 = vunpack.c.h.bf16 %v566_v52 }
  0xba   : > { %1018 = vperm.xlu2 %3062, %v2741_v53   ;;  %v3814_v43 = vpop.permute.xlu2 %303  ;;  %v421_v29 = vadd.f32 %v405_v10, %v352_v13  ;;  %v418_v31 = vadd.f32 %v402_v17, %v349_v14  ;;  %v419_v35 = vadd.f32 %v403_v20, %v350_v15  ;;  %v471_v42 = vmul.f32 %v3777_v0, %v3753_v51 }
  0xbb   : > { %3088 = vtanh.f32 %v579_v54  ;;  %v472_v22 = vmul.f32 %v3779_v2, %v3753_v51  ;;  %v398_v26 = vmul.f32 %v3765_v57, %v3745_v49  ;;  %v399_v50 = vmul.f32 %v3767_v58, %v3745_v49 }
  0xbc   : > { %3090 = vtanh.f32 %v580_v55  ;;  %v489_v48 = vadd.f32 %v473_v24, %v420_v27  ;;  %v467_v53 = vmul.f32 %v3777_v0, %v3773_v61  ;;  %v490_v54 = vadd.f32 %v474_v25, %v421_v29 }
  0xbd   : > { %3092 = vtanh.f32 %v581_v56  ;;  %v487_v55 = vadd.f32 %v471_v42, %v418_v31  ;;  %v488_v56 = vadd.f32 %v472_v22, %v419_v35  ;;  %v468_v51 = vmul.f32 %v3779_v2, %v3773_v61 }
  0xbe   : > { %3094 = vtanh.f32 %v582_v62  ;;  %v309_v18 = vpop.permute.xlu0 %308  ;;  %v553_v62 = vadd.f32 %v3803_v33, %v489_v48  ;;  %v554_v49 = vadd.f32 %v3803_v33, %v490_v54 }
  0xbf   : > { %v371_v16 = vpop.permute.xlu1 %370  ;;  %v345_v39 = vmul.f32 %v3769_v59, %v309_v18  ;;  %v346_v36 = vmul.f32 %v3771_v60, %v309_v18 }
  0xc0   : > { %v400_v45 = vmul.f32 %v3765_v57, %v371_v16  ;;  %v401_v30 = vmul.f32 %v3767_v58, %v371_v16 }
  0xc1   : > { %v3089_v19 = vpop.eup %3088  ;;  %1484 = vperm.xlu1 %3063, %v3568_v1   ;;  %v414_v63 = vadd.f32 %v398_v26, %v345_v39  ;;  %v415_v8 = vadd.f32 %v399_v50, %v346_v36 }
  0xc2   : > { %v3091_v23 = vpop.eup %3090  ;;  %1489 = vperm.xlu2 %3062, %v3581_v5   ;;  %v416_v44 = vadd.f32 %v400_v45, %v347_v32  ;;  %v417_v52 = vadd.f32 %v401_v30, %v348_v38 }
  0xc3   : > { %v3093_v28 = vpop.eup %3092  ;;  %v3843_v34 = vpop.permute.xlu2 %427  ;;  %v483_v20 = vadd.f32 %v467_v53, %v414_v63  ;;  %v484_v45 = vadd.f32 %v468_v51, %v415_v8 }
  0xc4   : > { %v3095_v37 = vpop.eup %3094  ;;  %v605_v40 = vpack.c.bf16 %v3093_v28, %v3089_v19  ;;  %v485_v13 = vadd.f32 %v469_v21, %v416_v44  ;;  %v486_v17 = vadd.f32 %v470_v41, %v417_v52 }
  0xc5   : > { %v606_v47 = vpack.c.bf16 %v3095_v37, %v3091_v23 }
  0xc6   : > { %700 = vmatpush.bf16.msra.mxu0 %v605_v40  ;;  %v521_v16 = vpop.permute.xlu0 %520 }
  0xc7   : > { %729 = vmatpush.bf16.msra.mxu1 %v606_v47  ;;  %v549_v23 = vadd.f32 %v521_v16, %v485_v13  ;;  %v550_v25 = vadd.f32 %v521_v16, %v486_v17  ;;  %v343_v13 = vmul.f32 %v3769_v59, %v3814_v43 }
  0xc8   : > { %v526_v10 = vpop.permute.xlu1 %525 }
  0xc9   : > { %v551_v14 = vadd.f32 %v526_v10, %v487_v55  ;;  %v552_v15 = vadd.f32 %v526_v10, %v488_v56  ;;  %3065 = vset.pattern.permute.xlu1 %v4577_v4  ;;  %v394_v10 = vmul.f32 %v3765_v57, %v3735_v46 }
  0xca   : > { %1542 = vperm.xlu1 %3065, %v3581_v5   ;;  %3066 = vset.pattern.permute.xlu2 %v4575_v3 }
  0xcb   : > { %v563_v18 = vpack.c.bf16 %v553_v62, %v551_v14  ;;  %v564_v61 = vpack.c.bf16 %v554_v49, %v552_v15  ;;  %1607 = vperm.xlu2 %3066, %v3568_v1   ;;  %v395_v49 = vmul.f32 %v3767_v58, %v3735_v46  ;;  %v344_v14 = vmul.f32 %v3771_v60, %v3814_v43 }
  0xcc   : > { %v516_v19 = vpop.permute.xlu2 %515  ;;  %v464_v46 = vmul.f32 %v3779_v2, %v3843_v34 }
  0xcd   : > { %v575_v33 = vunpack.c.l.bf16 %v563_v18  ;;  %v576_v21 = vunpack.c.l.bf16 %v564_v61  ;;  %v577_v24 = vunpack.c.h.bf16 %v563_v18  ;;  %v578_v27 = vunpack.c.h.bf16 %v564_v61 }
  0xce   : > { %v547_v30 = vadd.f32 %v516_v19, %v483_v20  ;;  %v548_v28 = vadd.f32 %v516_v19, %v484_v45  ;;  %v3876_v55 = vpop.permute.xlu0 %645 }
  0xcf   : > { %3096 = vtanh.f32 %v575_v33 }
  0xd0   : > { %3098 = vtanh.f32 %v576_v21  ;;  %v561_v41 = vpack.c.bf16 %v549_v23, %v547_v30  ;;  %v562_v29 = vpack.c.bf16 %v550_v25, %v548_v28  ;;  %v299_v31 = vpop.permute.xlu1 %298 }
  0xd1   : > { %3100 = vtanh.f32 %v577_v24  ;;  %v341_v56 = vmul.f32 %v3769_v59, %v299_v31  ;;  %v342_v51 = vmul.f32 %v3771_v60, %v299_v31 }
  0xd2   : > { %3102 = vtanh.f32 %v578_v27  ;;  %v571_v35 = vunpack.c.l.bf16 %v561_v41  ;;  %v572_v1 = vunpack.c.l.bf16 %v562_v29  ;;  %v573_v32 = vunpack.c.h.bf16 %v561_v41  ;;  %3067 = vset.pattern.permute.xlu1 %v4575_v3 }
  0xd3   : > { %v574_v37 = vunpack.c.h.bf16 %v562_v29  ;;  %1611 = vperm.xlu1 %3067, %v3581_v5   ;;  %3068 = vset.pattern.permute.xlu2 %v3474_v9  ;;  %v411_v59 = vadd.f32 %v395_v49, %v342_v51  ;;  %v2972_v49 = vld [vmem:[%s4570_s3 + $0x18] sm:$0xff] }
  0xd4   : > { %3104 = vtanh.f32 %v571_v35  ;;  %v511_v38 = vpop.permute.xlu2 %510  ;;  %1474 = vperm.xlu2 %3068, %v3595_v7  }
  0xd5   : > { %v3097_v39 = vpop.eup %3096  ;;  %3106 = vtanh.f32 %v572_v1  ;;  %v480_v20 = vadd.f32 %v464_v46, %v411_v59 }
  0xd6   : > { %v3099_v36 = vpop.eup %3098  ;;  %3108 = vtanh.f32 %v573_v32  ;;  %v3902_v23 = vpop.permute.xlu0 %640 }
  0xd7   : > { %v3101_v40 = vpop.eup %3100  ;;  %3110 = vtanh.f32 %v574_v37 }
  0xd8   : > { %v3103_v42 = vpop.eup %3102  ;;  %v603_v22 = vpack.c.bf16 %v3101_v40, %v3097_v39  ;;  %v2969_v39 = vld [vmem:[%s4570_s3] sm:$0xff] }
  0xd9   : > { %v604_v44 = vpack.c.bf16 %v3103_v42, %v3099_v36  ;;  %v363_v47 = vpop.permute.xlu1 %362 }
  0xda   : > { %v3105_v26 = vpop.eup %3104  ;;  %701 = vmatpush.bf16.msra.mxu0 %v603_v22  ;;  %v396_v62 = vmul.f32 %v3765_v57, %v363_v47  ;;  %v397_v63 = vmul.f32 %v3767_v58, %v363_v47  ;;  %v463_v57 = vmul.f32 %v3777_v0, %v3843_v34  ;;  %v410_v58 = vadd.f32 %v394_v10, %v341_v56  ;;  %v2970_v47 = vld [vmem:[%s4570_s3 + $0x8] sm:$0xff] }
  0xdb   : > { %v3107_v50 = vpop.eup %3106  ;;  %730 = vmatpush.bf16.msra.mxu1 %v604_v44  ;;  %3069 = vset.pattern.permute.xlu1 %v4577_v4 }
  0xdc   : > { %v3109_v5 = vpop.eup %3108  ;;  %v3871_v48 = vpop.permute.xlu2 %660  ;;  %1530 = vperm.xlu1 %3069, %v3595_v7   ;;  %3070 = vset.pattern.permute.xlu2 %v4577_v4  ;;  %v412_v60 = vadd.f32 %v396_v62, %v343_v13  ;;  %v413_v43 = vadd.f32 %v397_v63, %v344_v14  ;;  %v479_v19 = vadd.f32 %v463_v57, %v410_v58  ;;  %v2817_v13 = vld [vmem:[%s3750_s30 + $0xa] ss:$4 sm:$0x3] }
  0xdd   : > { %v3111_v52 = vpop.eup %3110  ;;  %v601_v53 = vpack.c.bf16 %v3109_v5, %v3105_v26  ;;  %1534 = vperm.xlu2 %3070, %v3586_v6   ;;  %v3977_v57 = vperm.slane %v2817_v13, 0  ;;  %v3979_v46 = vperm.slane %v2817_v13, 1 }
  0xde   : > { %v602_v54 = vpack.c.bf16 %v3111_v52, %v3107_v50  ;;  %v3912_v41 = vpop.permute.xlu0 %852 }
  0xdf   : > { %702 = vmatpush.bf16.msra.mxu0 %v601_v53  ;;  %v2971_v53 = vld [vmem:[%s4570_s3 + $0x10] sm:$0xff] }
  0xe0   : > { %731 = vmatpush.bf16.msra.mxu1 %v602_v54 }
  0xe2   : > { %v432_v8 = vpop.permute.xlu1 %431 }
  0xe3   : > { %v465_v15 = vmul.f32 %v3777_v0, %v432_v8  ;;  %v466_v16 = vmul.f32 %v3779_v2, %v432_v8  ;;  %v2816_v8 = vld [vmem:[%s3750_s30 + $0x9] ss:$4 sm:$0x3] }
  0xe4   : > { %v3892_v17 = vpop.permute.xlu2 %635  ;;  %3071 = vset.pattern.permute.xlu1 %v4575_v3  ;;  %v3972_v14 = vperm.slane %v2816_v8, 0 }
  0xe5   : > { %1599 = vperm.xlu1 %3071, %v3595_v7   ;;  %3072 = vset.pattern.permute.xlu2 %v4575_v3  ;;  %v481_v18 = vadd.f32 %v465_v15, %v412_v60  ;;  %v482_v61 = vadd.f32 %v466_v16, %v413_v43  ;;  %v3974_v15 = vperm.slane %v2816_v8, 1  ;;  %v2815_v16 = vld [vmem:[%s3750_s30 + $0x8] ss:$4 sm:$0x3]  ;;  %s2596_s30 = sshll.u32 %s4463_s23, 4  ;;  %s2597_s30 = int_to_ptr.vmem [resolvable:$true] %s2596_s30 }
  0xe6   : > { %1603 = vperm.xlu2 %3072, %v3586_v6   ;;  %v3983_v60 = vperm.slane %v2815_v16, 0  ;;  %v3985_v43 = vperm.slane %v2815_v16, 1 }
  0xe7   : > { %v545_v2 = vadd.f32 %v511_v38, %v481_v18  ;;  %v546_v34 = vadd.f32 %v511_v38, %v482_v61 }
  0xeb   : > { %v506_v45 = vpop.permute.xlu1 %505 }
  0xec   : > { %v543_v0 = vadd.f32 %v506_v45, %v479_v19  ;;  %v544_v33 = vadd.f32 %v506_v45, %v480_v20  ;;  %v3904_v7 = vpop.permute.xlu2 %630 }
  0xed   : > { %3073 = vset.pattern.permute.xlu1 %v3474_v9 }
  0xee   : > { %v559_v21 = vpack.c.bf16 %v545_v2, %v543_v0  ;;  %v560_v24 = vpack.c.bf16 %v546_v34, %v544_v33  ;;  %1696 = vperm.xlu1 %3073, %v3618_v11   ;;  %3074 = vset.pattern.permute.xlu2 %v3474_v9 }
  0xef   : > { %1464 = vperm.xlu2 %3074, %v3628_v12  }
  0xf0   : > { %v567_v6 = vunpack.c.l.bf16 %v559_v21  ;;  %v568_v25 = vunpack.c.l.bf16 %v560_v24  ;;  %v569_v27 = vunpack.c.h.bf16 %v559_v21  ;;  %v570_v30 = vunpack.c.h.bf16 %v560_v24 }
  0xf2   : > { %3112 = vtanh.f32 %v567_v6 }
  0xf3   : > { %3114 = vtanh.f32 %v568_v25  ;;  %v3910_v28 = vpop.permute.xlu1 %655 }
  0xf4   : > { %3116 = vtanh.f32 %v569_v27  ;;  %v3915_v29 = vpop.permute.xlu2 %842 }
  0xf5   : > { %3118 = vtanh.f32 %v570_v30 }
  0xf6   : > { %3075 = vset.pattern.permute.xlu1 %v4577_v4 }
  0xf7   : > { %1522 = vperm.xlu1 %3075, %v3628_v12   ;;  %3076 = vset.pattern.permute.xlu2 %v4577_v4  ;;  %v3925_v12 = vpop.permute.xlu0 %847 }
  0xf8   : > { %v3113_v11 = vpop.eup %3112 }
  0xf9   : > { %v3115_v31 = vpop.eup %3114 }
  0xfa   : > { %v3117_v35 = vpop.eup %3116 }
  0xfb   : > { %v3119_v1 = vpop.eup %3118  ;;  %v3919_v32 = vpop.permute.xlu1 %650  ;;  %v599_v37 = vpack.c.bf16 %v3117_v35, %v3113_v11 }
  0xfc   : > { %v600_v38 = vpack.c.bf16 %v3119_v1, %v3115_v31  ;;  %v3928_v36 = vpop.permute.xlu2 %837 }
  0xfd   : > { %703 = vmatpush.bf16.msra.mxu0 %v599_v37 }
  0xfe   : > { %732 = vmatpush.bf16.msra.mxu1 %v600_v38 }
  0xff   : > { %3079 = vset.pattern.permute.xlu1 %v4575_v3  ;;  %v3933_v42 = vpop.permute.xlu0 %822 }
 0x100   : > { %2685 = vmatmul.msk.bf16.vlgmr.msra.gmra.mxu0 %vm683_vm0, %v2969_v39 }
 0x101   : > { %2689 = vmatmul.msk.bf16.vlgmr.msra.gmra.mxu1 %vm683_vm0, %v2969_v39 }
 0x103   : > { %v3931_v40 = vpop.permute.xlu1 %625 }
 0x104   : > { %v3935_v22 = vpop.permute.xlu2 %1048 }
 0x107   : > { %v3946_v50 = vpop.permute.xlu0 %1053 }
 0x10b   : > { %v3937_v44 = vpop.permute.xlu1 %857 }
 0x10c   : > { %v3948_v5 = vpop.permute.xlu2 %1043 }
 0x10f   : > { %v3955_v54 = vpop.permute.xlu0 %1028 }
 0x110   : > { %2686 = vmatmul.msk.bf16.gmra.mxu0 %vm683_vm0, %v2970_v47 }
 0x111   : > { %2690 = vmatmul.msk.bf16.gmra.mxu1 %vm683_vm0, %v2970_v47 }
 0x113   : > { %v3944_v26 = vpop.permute.xlu1 %832 }
 0x114   : > { %v3957_v56 = vpop.permute.xlu2 %1018 }
 0x117   : > { %v3963_v62 = vpop.permute.xlu0 %1023 }
 0x11b   : > { %v3950_v52 = vpop.permute.xlu1 %827 }
 0x11c   : > { %v1490_v63 = vpop.permute.xlu2 %1489 }
 0x11d   : > { %v1511_v25 = vmul.f32 %v3983_v60, %v1490_v63  ;;  %v1512_v27 = vmul.f32 %v3985_v43, %v1490_v63 }
 0x11f   : > { %v1539_v58 = vpop.permute.xlu0 %1538 }
 0x120   : > { %2687 = vmatmul.msk.bf16.gmra.mxu0 %vm683_vm0, %v2971_v53  ;;  %v1562_v18 = vmul.f32 %v3972_v14, %v1539_v58  ;;  %v1563_v61 = vmul.f32 %v3974_v15, %v1539_v58 }
 0x121   : > { %2691 = vmatmul.msk.bf16.gmra.mxu1 %vm683_vm0, %v2971_v53 }
 0x123   : > { %v3961_v51 = vpop.permute.xlu1 %1038 }
 0x125   : > { %v1608_v59 = vpop.permute.xlu2 %1607 }
 0x126   : > { %v1631_v0 = vmul.f32 %v3977_v57, %v1608_v59  ;;  %v1632_v33 = vmul.f32 %v3979_v46, %v1608_v59 }
 0x127   : > { %v3997_v37 = vpop.permute.xlu0 %1591 }
 0x12b   : > { %v3966_v10 = vpop.permute.xlu1 %1033 }
 0x12f   : > { %v4001_v39 = vpop.permute.xlu0 %1479 }
 0x130   : > { %2688 = vmatmul.msk.bf16.gmra.mxu0 %vm683_vm0, %v2972_v49 }
 0x131   : > { %2692 = vmatmul.msk.bf16.gmra.mxu1 %vm683_vm0, %v2972_v49 }
 0x133   : > { %v1485_v19 = vpop.permute.xlu1 %1484 }
 0x134   : > { %v1509_v20 = vmul.f32 %v3983_v60, %v1485_v19  ;;  %v1510_v45 = vmul.f32 %v3985_v43, %v1485_v19 }
 0x136   : > { %v1578_v2 = vadd.f32 %v1562_v18, %v1509_v20  ;;  %v1579_v34 = vadd.f32 %v1563_v61, %v1510_v45 }
 0x137   : > { %v1692_v63 = vpop.permute.xlu0 %1691 }
 0x138   : > { %v1647_v21 = vadd.f32 %v1631_v0, %v1578_v2  ;;  %v1648_v24 = vadd.f32 %v1632_v33, %v1579_v34 }
 0x13a   : > { %v1711_v58 = vadd.f32 %v1692_v63, %v1647_v21  ;;  %v1712_v59 = vadd.f32 %v1692_v63, %v1648_v24 }
 0x13c   : > { %v1543_v6 = vpop.permute.xlu1 %1542 }
 0x13d   : > { %v1564_v30 = vmul.f32 %v3972_v14, %v1543_v6  ;;  %v1565_v11 = vmul.f32 %v3974_v15, %v1543_v6 }
 0x13f   : > { %v1580_v31 = vadd.f32 %v1564_v30, %v1511_v25  ;;  %v1581_v35 = vadd.f32 %v1565_v11, %v1512_v27 }
 0x145   : > { %v1612_v1 = vpop.permute.xlu1 %1611 }
 0x146   : > { %v1633_v53 = vmul.f32 %v3977_v57, %v1612_v1  ;;  %v1634_v8 = vmul.f32 %v3979_v46, %v1612_v1 }
 0x148   : > { %v1649_v49 = vadd.f32 %v1633_v53, %v1580_v31  ;;  %v1650_v13 = vadd.f32 %v1634_v8, %v1581_v35 }
 0x14e   : > { %v3999_v38 = vpop.permute.xlu1 %1530 }
 0x157   : > { %v4003_v47 = vpop.permute.xlu1 %1599 }
 0x160   : > { %v1697_v16 = vpop.permute.xlu1 %1696 }
 0x161   : > { %v1713_v18 = vadd.f32 %v1697_v16, %v1649_v49  ;;  %v1714_v61 = vadd.f32 %v1697_v16, %v1650_v13 }
 0x163   : > { %v4007_v19 = vpack.c.bf16 %v1713_v18, %v1711_v58  ;;  %v4009_v20 = vpack.c.bf16 %v1714_v61, %v1712_v59 }
 0x17d   : > { %v705_v45 = vpop.f32.mrf.mxu0 }
 0x17e   : > { %v734_v0 = vpop.f32.mrf.mxu1 }
 0x185   : > { %v707_v33 = vpop.f32.mrf.mxu0 }
 0x186   : > { %v736_v2 = vpop.f32.mrf.mxu1 }
 0x18d   : > { %v710_v34 = vpop.f32.mrf.mxu0 }
 0x18e   : > { %v739_v6 = vpop.f32.mrf.mxu1 }
 0x195   : > { %v712_v25 = vpop.f32.mrf.mxu0 }
 0x196   : > { %v741_v27 = vpop.f32.mrf.mxu1  ;;  %v713_v49 = vadd.f32 %v712_v25, %v3902_v23 }
 0x19d   : > { %v715_v30 = vpop.f32.mrf.mxu0 }
 0x19e   : > { %v744_v11 = vpop.f32.mrf.mxu1  ;;  %v716_v53 = vadd.f32 %v715_v30, %v3876_v55  ;;  %v711_v30 = vadd.f32 %v710_v34, %v3892_v17  ;;  %v737_v34 = vadd.f32 %v736_v2, %v3904_v7 }
 0x19f   : > { %v745_v16 = vadd.f32 %v744_v11, %v3876_v55  ;;  %v740_v55 = vadd.f32 %v739_v6, %v3892_v17 }
 0x1a5   : > { %v717_v31 = vpop.f32.mrf.mxu0 }
 0x1a6   : > { %v746_v35 = vpop.f32.mrf.mxu1  ;;  %v718_v24 = vadd.f32 %v717_v31, %v3919_v32 }
 0x1a7   : > { %v747_v63 = vadd.f32 %v746_v35, %v3919_v32  ;;  %v742_v32 = vadd.f32 %v741_v27, %v3902_v23 }
 0x1a8   : > { %v758_v8 = vpack.c.bf16 %v718_v24, %v716_v53  ;;  %v708_v24 = vadd.f32 %v707_v33, %v3904_v7  ;;  %v735_v33 = vadd.f32 %v734_v0, %v3931_v40 }
 0x1a9   : > { %v759_v35 = vpack.c.bf16 %v747_v63, %v745_v16 }
 0x1aa   : > { %v770_v58 = vunpack.c.l.bf16 %v758_v8  ;;  %v772_v3 = vunpack.c.h.bf16 %v758_v8  ;;  %v706_v8 = vadd.f32 %v705_v45, %v3931_v40 }
 0x1ab   : > { %v771_v23 = vunpack.c.l.bf16 %v759_v35  ;;  %v773_v27 = vunpack.c.h.bf16 %v759_v35 }
 0x1ac   : > { %3120 = vtanh.f32 %v770_v58  ;;  %v754_v17 = vpack.c.bf16 %v708_v24, %v706_v8 }
 0x1ad   : > { %v720_v21 = vpop.f32.mrf.mxu0  ;;  %3122 = vtanh.f32 %v772_v3 }
 0x1ae   : > { %v749_v1 = vpop.f32.mrf.mxu1  ;;  %v721_v59 = vadd.f32 %v720_v21, %v3910_v28  ;;  %v756_v21 = vpack.c.bf16 %v713_v49, %v711_v30  ;;  %v755_v49 = vpack.c.bf16 %v737_v34, %v735_v33  ;;  %v762_v2 = vunpack.c.l.bf16 %v754_v17 }
 0x1af   : > { %v750_v31 = vadd.f32 %v749_v1, %v3910_v28  ;;  %v757_v1 = vpack.c.bf16 %v742_v32, %v740_v55 }
 0x1b0   : > { %v768_v6 = vunpack.c.h.bf16 %v756_v21  ;;  %v763_v40 = vunpack.c.l.bf16 %v755_v49 }
 0x1b1   : > { %v767_v45 = vunpack.c.l.bf16 %v757_v1  ;;  %v769_v16 = vunpack.c.h.bf16 %v757_v1 }
 0x1b2   : > { %v3121_v63 = vpop.eup %3120 }
 0x1b3   : > { %v3123_v3 = vpop.eup %3122 }
 0x1b4   : > { %v798_v24 = vpack.c.bf16 %v3123_v3, %v3121_v63 }
 0x1b5   : > { %v722_v13 = vpop.f32.mrf.mxu0 }
 0x1b6   : > { %v723_v18 = vadd.f32 %v722_v13, %v3871_v48  ;;  %v751_v61 = vpop.f32.mrf.mxu1 }
 0x1b7   : > { %v752_v4 = vadd.f32 %v751_v61, %v3871_v48 }
 0x1b8   : > { %v760_v25 = vpack.c.bf16 %v723_v18, %v721_v59  ;;  %v764_v59 = vunpack.c.h.bf16 %v754_v17  ;;  %v2974_v17 = vld [vmem:[%s4570_s3 + $0x28] sm:$0xff] }
 0x1b9   : > { %v761_v11 = vpack.c.bf16 %v752_v4, %v750_v31  ;;  %v766_v4 = vunpack.c.l.bf16 %v756_v21  ;;  %v765_v31 = vunpack.c.h.bf16 %v755_v49 }
 0x1ba   : > { %v774_v53 = vunpack.c.l.bf16 %v760_v25  ;;  %v776_v13 = vunpack.c.h.bf16 %v760_v25 }
 0x1bb   : > { %v775_v28 = vunpack.c.l.bf16 %v761_v11  ;;  %v777_v48 = vunpack.c.h.bf16 %v761_v11 }
 0x1bc   : > { %3124 = vtanh.f32 %v774_v53 }
 0x1bd   : > { %3126 = vtanh.f32 %v776_v13 }
 0x1be   : > { %3128 = vtanh.f32 %v775_v28 }
 0x1bf   : > { %3130 = vtanh.f32 %v777_v48 }
 0x1c0   : > { %3132 = vtanh.f32 %v771_v23 }
 0x1c1   : > { %3134 = vtanh.f32 %v773_v27  ;;  %v2973_v27 = vld [vmem:[%s4570_s3 + $0x20] sm:$0xff] }
 0x1c2   : > { %v3125_v7 = vpop.eup %3124  ;;  %3136 = vtanh.f32 %v766_v4  ;;  %v2975_v4 = vld [vmem:[%s4570_s3 + $0x30] sm:$0xff] }
 0x1c3   : > { %v3127_v58 = vpop.eup %3126  ;;  %3138 = vtanh.f32 %v768_v6  ;;  %v2976_v6 = vld [vmem:[%s4570_s3 + $0x38] sm:$0xff] }
 0x1c4   : > { %v3129_v18 = vpop.eup %3128  ;;  %3140 = vtanh.f32 %v767_v45  ;;  %v800_v0 = vpack.c.bf16 %v3127_v58, %v3125_v7 }
 0x1c5   : > { %v3131_v61 = vpop.eup %3130  ;;  %3142 = vtanh.f32 %v769_v16 }
 0x1c6   : > { %v3133_v30 = vpop.eup %3132  ;;  %3144 = vtanh.f32 %v762_v2  ;;  %896 = vmatpush.bf16.msra.mxu2 %v800_v0  ;;  %v801_v32 = vpack.c.bf16 %v3131_v61, %v3129_v18  ;;  %v1447_v2 = vld [vmem:[%s4568_s1 + $0x18] sm:$0xff]  ;;  %v1653_v61 = vld [vmem:[%s4569_s2 + $0x10] sm:$0xff] }
 0x1c7   : > { %v3135_v35 = vpop.eup %3134  ;;  %3146 = vtanh.f32 %v764_v59  ;;  %1469 = vperm.xlu0 %3078, %v1447_v2   ;;  %1595 = vperm.xlu1 %3079, %v1447_v2  }
 0x1c8   : > { %v3137_v25 = vpop.eup %3136  ;;  %3148 = vtanh.f32 %v763_v40  ;;  %925 = vmatpush.bf16.msra.mxu3 %v801_v32  ;;  %v799_v21 = vpack.c.bf16 %v3135_v35, %v3133_v30  ;;  %1526 = vperm.xlu2 %3076, %v1447_v2   ;;  %v4057_v40 = vld [vmem:[%s4568_s1 + $0x8] sm:$0xff] }
 0x1c9   : > { %v3139_v55 = vpop.eup %3138  ;;  %3150 = vtanh.f32 %v765_v31  ;;  %v1652_v32 = vld [vmem:[%s4569_s2 + $0x8] sm:$0xff] }
 0x1ca   : > { %v3141_v11 = vpop.eup %3140  ;;  %897 = vmatpush.bf16.msra.mxu2 %v798_v24  ;;  %v796_v8 = vpack.c.bf16 %v3139_v55, %v3137_v25 }
 0x1cb   : > { %v3143_v53 = vpop.eup %3142 }
 0x1cc   : > { %v3145_v13 = vpop.eup %3144  ;;  %926 = vmatpush.bf16.msra.mxu3 %v799_v21  ;;  %v797_v34 = vpack.c.bf16 %v3143_v53, %v3141_v11  ;;  %v4072_v53 = vld [vmem:[%s4571_s4 + $0xe0] sm:$0xff] }
 0x1cd   : > { %v3147_v28 = vpop.eup %3146 }
 0x1ce   : > { %v3149_v48 = vpop.eup %3148  ;;  %898 = vmatpush.bf16.msra.mxu2 %v796_v8  ;;  %v794_v23 = vpack.c.bf16 %v3147_v28, %v3145_v13  ;;  %v1656_v13 = vld [vmem:[%s4569_s2 + $0x28] sm:$0xff] }
 0x1cf   : > { %v3151_v1 = vpop.eup %3150  ;;  %3081 = vset.pattern.permute.xlu1 %v3474_v9  ;;  %1459 = vperm.xlu0 %3078, %v4057_v40  }
 0x1d0   : > { %927 = vmatpush.bf16.msra.mxu3 %v797_v34  ;;  %v795_v33 = vpack.c.bf16 %v3151_v1, %v3149_v48  ;;  %3080 = vset.pattern.permute.xlu2 %v3474_v9 }
 0x1d1   : > { %1686 = vperm.xlu1 %3081, %v1656_v13  }
 0x1d2   : > { %899 = vmatpush.bf16.msra.mxu2 %v794_v23 }
 0x1d4   : > { %928 = vmatpush.bf16.msra.mxu3 %v795_v33 }
 0x1d5   : > { %2725 = vmatmul.msk.bf16.vlgmr.msra.gmra.mxu2 %vm683_vm0, %v2973_v27 }
 0x1d7   : > { %2729 = vmatmul.msk.bf16.vlgmr.msra.gmra.mxu3 %vm683_vm0, %v2973_v27  ;;  %1671 = vperm.xlu0 %3078, %v1653_v61  }
 0x1df   : > { %1666 = vperm.xlu0 %3078, %v1652_v32  }
 0x1e5   : > { %2726 = vmatmul.msk.bf16.gmra.mxu2 %vm683_vm0, %v2974_v17 }
 0x1e7   : > { %2730 = vmatmul.msk.bf16.gmra.mxu3 %vm683_vm0, %v2974_v17  ;;  %1234 = vperm.xlu0 %3078, %v4072_v53  }
 0x1f5   : > { %2727 = vmatmul.msk.bf16.gmra.mxu2 %vm683_vm0, %v2975_v4 }
 0x1f7   : > { %2731 = vmatmul.msk.bf16.gmra.mxu3 %vm683_vm0, %v2975_v4 }
 0x205   : > { %2728 = vmatmul.msk.bf16.gmra.mxu2 %vm683_vm0, %v2976_v6 }
 0x207   : > { %2732 = vmatmul.msk.bf16.gmra.mxu3 %vm683_vm0, %v2976_v6 }
 0x258   : > { %v901_v63 = vpop.f32.mrf.mxu2 }
 0x25a   : > { %v4047_v49 = vpop.f32.mrf.mxu3 }
 0x260   : > { %v903_v45 = vpop.f32.mrf.mxu2 }
 0x262   : > { %v932_v3 = vpop.f32.mrf.mxu3 }
 0x268   : > { %v906_v16 = vpop.f32.mrf.mxu2 }
 0x269   : > { %v907_v23 = vadd.f32 %v906_v16, %v3944_v26  ;;  %v902_v16 = vadd.f32 %v901_v63, %v3933_v42  ;;  %v4581_v63 = vmov 1  }
 0x26a   : > { %v935_v7 = vpop.f32.mrf.mxu3  ;;  %3082 = vset.pattern.permute.xlu1 %v4581_v63 }
 0x270   : > { %v908_v58 = vpop.f32.mrf.mxu2 }
 0x271   : > { %v909_v8 = vadd.f32 %v908_v58, %v3928_v36 }
 0x272   : > { %v937_v59 = vpop.f32.mrf.mxu3 }
 0x273   : > { %v938_v27 = vadd.f32 %v937_v59, %v3928_v36  ;;  %v933_v36 = vadd.f32 %v932_v3, %v3950_v52 }
 0x278   : > { %v911_v18 = vpop.f32.mrf.mxu2 }
 0x279   : > { %v912_v55 = vadd.f32 %v911_v18, %v3915_v29  ;;  %v936_v18 = vadd.f32 %v935_v7, %v3944_v26 }
 0x27a   : > { %v940_v0 = vpop.f32.mrf.mxu3 }
 0x27b   : > { %v941_v48 = vadd.f32 %v940_v0, %v3915_v29  ;;  %v904_v29 = vadd.f32 %v903_v45, %v3950_v52  ;;  %v952_v0 = vpack.c.bf16 %v909_v8, %v907_v23  ;;  %v953_v59 = vpack.c.bf16 %v938_v27, %v936_v18 }
 0x27c   : > { %v931_v52 = vadd.f32 %v4047_v49, %v3933_v42 }
 0x27d   : > { %v950_v3 = vpack.c.bf16 %v904_v29, %v902_v16  ;;  %v965_v13 = vunpack.c.h.bf16 %v953_v59 }
 0x27f   : > { %v960_v49 = vunpack.c.h.bf16 %v950_v3 }
 0x280   : > { %v913_v31 = vpop.f32.mrf.mxu2 }
 0x281   : > { %v914_v25 = vadd.f32 %v913_v31, %v3925_v12 }
 0x282   : > { %v942_v30 = vpop.f32.mrf.mxu3 }
 0x283   : > { %v954_v11 = vpack.c.bf16 %v914_v25, %v912_v55  ;;  %v943_v21 = vadd.f32 %v942_v30, %v3925_v12  ;;  %v964_v25 = vunpack.c.h.bf16 %v952_v0  ;;  %v951_v55 = vpack.c.bf16 %v933_v36, %v931_v52 }
 0x285   : > { %v966_v34 = vunpack.c.l.bf16 %v954_v11  ;;  %v968_v33 = vunpack.c.h.bf16 %v954_v11  ;;  %v955_v4 = vpack.c.bf16 %v943_v21, %v941_v48  ;;  %v963_v11 = vunpack.c.l.bf16 %v953_v59  ;;  %v1777_v48 = vld [vmem:[%s4571_s4 + $0x30] sm:$0xff] }
 0x286   : > { %v961_v27 = vunpack.c.h.bf16 %v951_v55 }
 0x287   : > { %3152 = vtanh.f32 %v966_v34  ;;  %v967_v26 = vunpack.c.l.bf16 %v955_v4  ;;  %v969_v32 = vunpack.c.h.bf16 %v955_v4 }
 0x288   : > { %v916_v35 = vpop.f32.mrf.mxu2  ;;  %3154 = vtanh.f32 %v968_v33 }
 0x289   : > { %v917_v1 = vadd.f32 %v916_v35, %v3912_v41  ;;  %v962_v35 = vunpack.c.l.bf16 %v952_v0 }
 0x28a   : > { %v945_v24 = vpop.f32.mrf.mxu3 }
 0x28b   : > { %v946_v6 = vadd.f32 %v945_v24, %v3912_v41  ;;  %v4093_v41 = vld [vmem:[%s4571_s4 + $0xd8] sm:$0xff] }
 0x28c   : > { %1229 = vperm.xlu0 %3078, %v4093_v41  }
 0x28d   : > { %v3153_v24 = vpop.eup %3152 }
 0x28e   : > { %v3155_v21 = vpop.eup %3154 }
 0x28f   : > { %v994_v29 = vpack.c.bf16 %v3155_v21, %v3153_v24  ;;  %v2787_v24 = vld [vmem:[%s4571_s4 + $0xf0] sm:$0xff]  ;;  %v2781_v21 = vld [vmem:[%s4571_s4 + $0xc0] sm:$0xff] }
 0x290   : > { %v918_v28 = vpop.f32.mrf.mxu2 }
 0x291   : > { %v919_v12 = vadd.f32 %v918_v28, %v3937_v44  ;;  %v958_v28 = vunpack.c.l.bf16 %v950_v3  ;;  %v2977_v3 = vld [vmem:[%s4570_s3 + $0x40] sm:$0xff] }
 0x292   : > { %v947_v17 = vpop.f32.mrf.mxu3 }
 0x293   : > { %v956_v2 = vpack.c.bf16 %v919_v12, %v917_v1  ;;  %v948_v58 = vadd.f32 %v947_v17, %v3937_v44  ;;  %v4098_v44 = vld [vmem:[%s4568_s1] sm:$0xff]  ;;  %v959_v1 = vunpack.c.l.bf16 %v951_v55  ;;  %v2786_v55 = vld [vmem:[%s4571_s4 + $0xe8] sm:$0xff] }
 0x294   : > { %1514 = vperm.xlu1 %3082, %v4098_v44   ;;  %1811 = vperm.xlu0 %3078, %v1777_v48   ;;  %v2783_v48 = vld [vmem:[%s4571_s4 + $0xd0] sm:$0xff] }
 0x295   : > { %v970_v61 = vunpack.c.l.bf16 %v956_v2  ;;  %v972_v31 = vunpack.c.h.bf16 %v956_v2  ;;  %v957_v30 = vpack.c.bf16 %v948_v58, %v946_v6  ;;  %v4582_v6 = vmov 2   ;;  %v1655_v2 = vld [vmem:[%s4569_s2 + $0x20] sm:$0xff] }
 0x296   : > { %1681 = vperm.xlu2 %3080, %v1655_v2   ;;  %v2856_v2 = vld [vmem:[%s4571_s4 + $0x70] sm:$0xff] }
 0x297   : > { %3156 = vtanh.f32 %v970_v61  ;;  %v971_v45 = vunpack.c.l.bf16 %v957_v30  ;;  %v973_v7 = vunpack.c.h.bf16 %v957_v30  ;;  %v1776_v30 = vld [vmem:[%s4571_s4 + $0x28] sm:$0xff] }
 0x298   : > { %3158 = vtanh.f32 %v972_v31 }
 0x299   : > { %3160 = vtanh.f32 %v971_v45 }
 0x29a   : > { %3162 = vtanh.f32 %v973_v7  ;;  %v1654_v7 = vld [vmem:[%s4569_s2 + $0x18] sm:$0xff] }
 0x29b   : > { %3164 = vtanh.f32 %v967_v26 }
 0x29c   : > { %3166 = vtanh.f32 %v969_v32  ;;  %3084 = vset.pattern.permute.xlu1 %v4582_v6  ;;  %1806 = vperm.xlu0 %3078, %v1776_v30   ;;  %v2892_v30 = vld [vmem:[%s4571_s4 + $0x90] sm:$0xff] }
 0x29d   : > { %v3157_v8 = vpop.eup %3156  ;;  %3168 = vtanh.f32 %v962_v35  ;;  %1583 = vperm.xlu1 %3084, %v4098_v44  }
 0x29e   : > { %v3159_v42 = vpop.eup %3158  ;;  %3170 = vtanh.f32 %v964_v25  ;;  %1454 = vperm.xlu2 %3080, %v4098_v44   ;;  %v1771_v25 = vld [vmem:[%s4571_s4] sm:$0xff]  ;;  %v2857_v44 = vld [vmem:[%s4571_s4 + $0x78] sm:$0xff] }
 0x29f   : > { %v3161_v34 = vpop.eup %3160  ;;  %3172 = vtanh.f32 %v963_v11  ;;  %v996_v12 = vpack.c.bf16 %v3159_v42, %v3157_v8  ;;  %v2978_v11 = vld [vmem:[%s4570_s3 + $0x48] sm:$0xff]  ;;  %v1778_v8 = vld [vmem:[%s4571_s4 + $0x38] sm:$0xff] }
 0x2a0   : > { %v3163_v23 = vpop.eup %3162  ;;  %3174 = vtanh.f32 %v965_v13  ;;  %v1651_v13 = vld [vmem:[%s4569_s2] sm:$0xff]  ;;  %v2788_v42 = vld [vmem:[%s4571_s4 + $0xf8] sm:$0xff] }
 0x2a1   : > { %v3165_v33 = vpop.eup %3164  ;;  %3176 = vtanh.f32 %v958_v28  ;;  %1092 = vmatpush.bf16.msrb.mxu0 %v996_v12  ;;  %v997_v17 = vpack.c.bf16 %v3163_v23, %v3161_v34  ;;  %v2979_v28 = vld [vmem:[%s4570_s3 + $0x50] sm:$0xff]  ;;  %v2893_v34 = vld [vmem:[%s4571_s4 + $0x98] sm:$0xff]  ;;  %v2782_v23 = vld [vmem:[%s4571_s4 + $0xc8] sm:$0xff] }
 0x2a2   : > { %v3167_v4 = vpop.eup %3166  ;;  %3178 = vtanh.f32 %v960_v49  ;;  %v1773_v49 = vld [vmem:[%s4571_s4 + $0x10] sm:$0xff]  ;;  %v2980_v12 = vld [vmem:[%s4570_s3 + $0x58] sm:$0xff] }
 0x2a3   : > { %v3169_v58 = vpop.eup %3168  ;;  %3180 = vtanh.f32 %v959_v1  ;;  %1121 = vmatpush.bf16.msrb.mxu1 %v997_v17  ;;  %v995_v61 = vpack.c.bf16 %v3167_v4, %v3165_v33  ;;  %v1772_v1 = vld [vmem:[%s4571_s4 + $0x8] sm:$0xff]  ;;  %v1775_v33 = vld [vmem:[%s4571_s4 + $0x20] sm:$0xff]  ;;  %v2853_v17 = vld [vmem:[%s4571_s4 + $0x58] sm:$0xff] }
 0x2a4   : > { %v3171_v18 = vpop.eup %3170  ;;  %3182 = vtanh.f32 %v961_v27  ;;  %1781 = vperm.xlu0 %3078, %v1771_v25   ;;  %v2854_v27 = vld [vmem:[%s4571_s4 + $0x60] sm:$0xff]  ;;  %v1774_v4 = vld [vmem:[%s4571_s4 + $0x18] sm:$0xff]  ;;  %v1523_v25 = vpop.permute.xlu1 %1522 }
 0x2a5   : > { %v3173_v0 = vpop.eup %3172  ;;  %1093 = vmatpush.bf16.msrb.mxu0 %v994_v29  ;;  %v992_v36 = vpack.c.bf16 %v3171_v18, %v3169_v58  ;;  %3086 = vset.pattern.permute.xlu1 %v3474_v9  ;;  %v2540_v58 = vld [vmem:[#allocation2] sm:$0x1]  ;;  %v2895_v29 = vld [vmem:[%s4571_s4 + $0xa8] sm:$0xff] }
 0x2a6   : > { %v3175_v31 = vpop.eup %3174  ;;  %1676 = vperm.xlu1 %3086, %v1654_v7   ;;  %3083 = vset.pattern.permute.xlu2 %v4581_v63  ;;  %v2852_v63 = vld [vmem:[%s4571_s4 + $0x50] sm:$0xff]  ;;  %v2855_v18 = vld [vmem:[%s4571_s4 + $0x68] sm:$0xff] }
 0x2a7   : > { %v3177_v16 = vpop.eup %3176  ;;  %1122 = vmatpush.bf16.msrb.mxu1 %v995_v61  ;;  %v993_v45 = vpack.c.bf16 %v3175_v31, %v3173_v0  ;;  %1518 = vperm.xlu2 %3083, %v4057_v40   ;;  %v2890_v0 = vld [vmem:[%s4571_s4 + $0x80] sm:$0xff]  ;;  %v2897_v31 = vld [vmem:[%s4571_s4 + $0xb8] sm:$0xff] }
 0x2a8   : > { %v3179_v59 = vpop.eup %3178  ;;  %v2850_v61 = vld [vmem:[%s4571_s4 + $0x40] sm:$0xff] }
 0x2a9   : > { %v3181_v26 = vpop.eup %3180  ;;  %1094 = vmatpush.bf16.msrb.mxu0 %v992_v36  ;;  %v990_v52 = vpack.c.bf16 %v3179_v59, %v3177_v16  ;;  %v1475_v16 = vpop.permute.xlu2 %1474  ;;  %v2891_v36 = vld [vmem:[%s4571_s4 + $0x88] sm:$0xff] }
 0x2aa   : > { %v3183_v32 = vpop.eup %3182 }
 0x2ab   : > { %1123 = vmatpush.bf16.msrb.mxu1 %v993_v45  ;;  %v991_v35 = vpack.c.bf16 %v3183_v32, %v3181_v26 }
 0x2ac   : > { %2010 = vperm.xlu0 %3078, %v2857_v44  }
 0x2ad   : > { %1095 = vmatpush.bf16.msrb.mxu0 %v990_v52 }
 0x2ae   : > { %1244 = vperm.xlu1 %3086, %v2787_v24  }
 0x2af   : > { %1124 = vmatpush.bf16.msrb.mxu1 %v991_v35  ;;  %3085 = vset.pattern.permute.xlu2 %v4582_v6  ;;  %v2896_v6 = vld [vmem:[%s4571_s4 + $0xb0] sm:$0xff]  ;;  %v1391_v35 = vld [vmem:[#allocation2] sm:$0x1] }
 0x2b0   : > { %2765 = vmatmul.msk.bf16.vlgmr.msrb.gmra.mxu0 %vm683_vm0, %v2977_v3  ;;  %1587 = vperm.xlu2 %3085, %v4057_v40   ;;  %v2851_v40 = vld [vmem:[%s4571_s4 + $0x48] sm:$0xff] }
 0x2b1   : > { %v1535_v59 = vpop.permute.xlu2 %1534 }
 0x2b2   : > { %2769 = vmatmul.msk.bf16.vlgmr.msrb.gmra.mxu1 %vm683_vm0, %v2977_v3 }
 0x2b4   : > { %1985 = vperm.xlu0 %3078, %v2852_v63  }
 0x2b6   : > { %1239 = vperm.xlu1 %3086, %v2786_v55  }
 0x2b8   : > { %3087 = vset.pattern.permute.xlu2 %v3474_v9  ;;  %v2894_v9 = vld [vmem:[%s4571_s4 + $0xa0] sm:$0xff] }
 0x2b9   : > { %1661 = vperm.xlu2 %3087, %v1651_v13   ;;  %v1604_v45 = vpop.permute.xlu2 %1603  ;;  %v1505_v13 = vmul.f32 %v3983_v60, %v1475_v16 }
 0x2bc   : > { %1980 = vperm.xlu0 %3078, %v2851_v40   ;;  %v1560_v40 = vmul.f32 %v3972_v14, %v1535_v59 }
 0x2be   : > { %1214 = vperm.xlu1 %3086, %v2781_v21  }
 0x2c0   : > { %2766 = vmatmul.msk.bf16.gmra.mxu0 %vm683_vm0, %v2978_v11 }
 0x2c1   : > { %1249 = vperm.xlu2 %3087, %v2788_v42   ;;  %v1465_v3 = vpop.permute.xlu2 %1464 }
 0x2c2   : > { %2770 = vmatmul.msk.bf16.gmra.mxu1 %vm683_vm0, %v2978_v11  ;;  %v4249_v11 = vpop.permute.xlu1 %1595 }
 0x2c4   : > { %2189 = vperm.xlu0 %3078, %v2894_v9  }
 0x2c6   : > { %1816 = vperm.xlu1 %3086, %v1778_v8  }
 0x2c9   : > { %1224 = vperm.xlu2 %3087, %v2783_v48  }
 0x2cc   : > { %2184 = vperm.xlu0 %3078, %v2893_v34  }
 0x2ce   : > { %1791 = vperm.xlu1 %3086, %v1773_v49  }
 0x2d0   : > { %2767 = vmatmul.msk.bf16.gmra.mxu0 %vm683_vm0, %v2979_v28 }
 0x2d1   : > { %1219 = vperm.xlu2 %3087, %v2782_v23  }
 0x2d2   : > { %2771 = vmatmul.msk.bf16.gmra.mxu1 %vm683_vm0, %v2979_v28 }
 0x2d4   : > { %2393 = vperm.xlu0 %3078, %v2787_v24  }
 0x2d6   : > { %1786 = vperm.xlu1 %3086, %v1772_v1   ;;  %v1687_v1 = vpop.permute.xlu1 %1686 }
 0x2d9   : > { %1801 = vperm.xlu2 %3087, %v1775_v33   ;;  %v1561_v33 = vmul.f32 %v3974_v15, %v1535_v59  ;;  %v1738_v59 = vunpack.c.h.bf16 %v4009_v20 }
 0x2dc   : > { %2388 = vperm.xlu0 %3078, %v2786_v55  }
 0x2de   : > { %1995 = vperm.xlu1 %3086, %v2854_v27   ;;  %v1508_v27 = vmul.f32 %v3985_v43, %v4001_v39 }
 0x2e0   : > { %2768 = vmatmul.msk.bf16.gmra.mxu0 %vm683_vm0, %v2980_v12 }
 0x2e1   : > { %1796 = vperm.xlu2 %3087, %v1774_v4  }
 0x2e2   : > { %2772 = vmatmul.msk.bf16.gmra.mxu1 %vm683_vm0, %v2980_v12  ;;  %v1559_v12 = vmul.f32 %v3974_v15, %v3999_v38 }
 0x2e4   : > { %2363 = vperm.xlu0 %3078, %v2781_v21   ;;  %v1558_v21 = vmul.f32 %v3972_v14, %v3999_v38 }
 0x2e6   : > { %1990 = vperm.xlu1 %3086, %v2853_v17   ;;  %v1574_v9 = vadd.f32 %v1558_v21, %v1505_v13  ;;  %v1555_v21 = vmul.f32 %v3974_v15, %v1523_v25 }
 0x2e9   : > { %2005 = vperm.xlu2 %3087, %v2856_v2   ;;  %v1628_v2 = vmul.f32 %v3979_v46, %v4003_v47 }
 0x2ec   : > { %2543 = vperm.xlu0 %3078, %v2540_v58   ;;  %v1735_v58 = vunpack.c.l.bf16 %v4007_v19 }
 0x2ee   : > { %2199 = vperm.xlu1 %3086, %v2896_v6   ;;  %3184 = vtanh.f32 %v1735_v58 }
 0x2f1   : > { %2000 = vperm.xlu2 %3087, %v2855_v18  }
 0x2f4   : > { %v4294_v58 = vpop.eup %3184 }
 0x2f6   : > { %2194 = vperm.xlu1 %3086, %v2895_v29   ;;  %v1736_v29 = vunpack.c.l.bf16 %v4009_v20  ;;  %v1624_v20 = vmul.f32 %v3979_v46, %v3997_v37 }
 0x2f8   : > { %3186 = vtanh.f32 %v1736_v29 }
 0x2f9   : > { %1975 = vperm.xlu2 %3087, %v2850_v61   ;;  %v1577_v61 = vadd.f32 %v1561_v33, %v1508_v27 }
 0x2fe   : > { %2169 = vperm.xlu1 %3086, %v2890_v0   ;;  %v1470_v0 = vpop.permute.xlu0 %1469 }
 0x301   : > { %2204 = vperm.xlu2 %3087, %v2897_v31   ;;  %v1630_v31 = vmul.f32 %v3979_v46, %v1604_v45 }
 0x306   : > { %2398 = vperm.xlu1 %3086, %v2788_v42   ;;  %v1627_v42 = vmul.f32 %v3977_v57, %v4003_v47  ;;  %v1502_v47 = vmul.f32 %v3985_v43, %v1465_v3  ;;  %v1515_v13 = vpop.permute.xlu1 %1514  ;;  %v1460_v29 = vpop.permute.xlu0 %1459 }
 0x308   : > { %v1643_v17 = vadd.f32 %v1627_v42, %v1574_v9 }
 0x309   : > { %2179 = vperm.xlu2 %3087, %v2892_v30  }
 0x30e   : > { %2373 = vperm.xlu1 %3086, %v2783_v48   ;;  %v1629_v48 = vmul.f32 %v3977_v57, %v1604_v45  ;;  %v1646_v45 = vadd.f32 %v1630_v31, %v1577_v61  ;;  %v1551_v61 = vmul.f32 %v3974_v15, %v1515_v13 }
 0x311   : > { %2174 = vperm.xlu2 %3087, %v2891_v36   ;;  %v1737_v36 = vunpack.c.h.bf16 %v4007_v19  ;;  %v1623_v19 = vmul.f32 %v3977_v57, %v3997_v37 }
 0x313   : > { %3188 = vtanh.f32 %v1737_v36 }
 0x314   : > { %3190 = vtanh.f32 %v1738_v59 }
 0x316   : > { %2368 = vperm.xlu1 %3086, %v2782_v23   ;;  %v1506_v23 = vmul.f32 %v3985_v43, %v1475_v16 }
 0x318   : > { %v1575_v18 = vadd.f32 %v1559_v12, %v1506_v23 }
 0x319   : > { %2383 = vperm.xlu2 %3087, %v4072_v53   ;;  %v1527_v53 = vpop.permute.xlu2 %1526 }
 0x31a   : > { %v1556_v12 = vmul.f32 %v3972_v14, %v1527_v53  ;;  %v1557_v23 = vmul.f32 %v3974_v15, %v1527_v53 }
 0x321   : > { %2378 = vperm.xlu2 %3087, %v4093_v41   ;;  %v1507_v41 = vmul.f32 %v3983_v60, %v4001_v39  ;;  %v1682_v8 = vpop.permute.xlu2 %1681 }
 0x322   : > { %v1707_v30 = vadd.f32 %v1682_v8, %v1643_v17  ;;  %v1710_v17 = vadd.f32 %v1687_v1, %v1646_v45 }
 0x323   : > { %v1576_v49 = vadd.f32 %v1560_v40, %v1507_v41  ;;  %v1554_v41 = vmul.f32 %v3972_v14, %v1523_v25  ;;  %v1644_v40 = vadd.f32 %v1628_v2, %v1575_v18 }
 0x325   : > { %v1645_v4 = vadd.f32 %v1629_v48, %v1576_v49  ;;  %v1571_v49 = vadd.f32 %v1555_v21, %v1502_v47  ;;  %v1504_v48 = vmul.f32 %v3985_v43, %v1470_v0  ;;  %v1708_v33 = vadd.f32 %v1682_v8, %v1644_v40 }
 0x326   : > { %v1499_v8 = vmul.f32 %v3983_v60, %v1460_v29 }
 0x327   : > { %v1709_v39 = vadd.f32 %v1687_v1, %v1645_v4  ;;  %v1500_v1 = vmul.f32 %v3985_v43, %v1460_v29  ;;  %v4308_v59 = vadd.f32 %v1624_v20, %v1571_v49  ;;  %v1573_v21 = vadd.f32 %v1557_v23, %v1504_v48 }
 0x329   : > { %1394 = vperm.xlu2 %3087, %v1391_v35   ;;  %v1455_v38 = vpop.permute.xlu2 %1454  ;;  %v1501_v35 = vmul.f32 %v3983_v60, %v1465_v3  ;;  %v4281_v42 = vpack.c.bf16 %v1709_v39, %v1707_v30  ;;  %v1503_v3 = vmul.f32 %v3983_v60, %v1470_v0  ;;  %v1550_v0 = vmul.f32 %v3972_v14, %v1515_v13  ;;  %v1584_v13 = vpop.permute.xlu1 %1583 }
 0x32a   : > { %v1497_v37 = vmul.f32 %v3983_v60, %v1455_v38  ;;  %v1498_v18 = vmul.f32 %v3985_v43, %v1455_v38  ;;  %v1626_v60 = vmul.f32 %v3979_v46, %v4249_v11  ;;  %v4316_v43 = vpack.c.bf16 %v1710_v17, %v1708_v33 }
 0x32b   : > { %v1570_v9 = vadd.f32 %v1554_v41, %v1501_v35  ;;  %v1731_v4 = vunpack.c.l.bf16 %v4281_v42  ;;  %v1625_v35 = vmul.f32 %v3977_v57, %v4249_v11  ;;  %v1572_v41 = vadd.f32 %v1556_v12, %v1503_v3 }
 0x32c   : > { %v1619_v20 = vmul.f32 %v3977_v57, %v1584_v13  ;;  %v1620_v23 = vmul.f32 %v3979_v46, %v1584_v13 }
 0x32d   : > { %v4234_v26 = vpop.f32.mrf.mxu0  ;;  %v1639_v38 = vadd.f32 %v1623_v19, %v1570_v9  ;;  %3192 = vtanh.f32 %v1731_v4 }
 0x32f   : > { %v4236_v7 = vpop.f32.mrf.mxu1 }
 0x331   : > { %v1519_v31 = vpop.permute.xlu2 %1518 }
 0x332   : > { %v1552_v30 = vmul.f32 %v3972_v14, %v1519_v31  ;;  %v1553_v39 = vmul.f32 %v3974_v15, %v1519_v31  ;;  %v1566_v14 = vadd.f32 %v1550_v0, %v1497_v37  ;;  %v4318_v15 = vadd.f32 %v1551_v61, %v1498_v18  ;;  %v1672_v18 = vpop.permute.xlu0 %1671 }
 0x334   : > { %v1568_v45 = vadd.f32 %v1552_v30, %v1499_v8  ;;  %v4321_v19 = vadd.f32 %v1553_v39, %v1500_v1  ;;  %v1127_v1 = vadd.f32 %v4236_v7, %v3957_v56  ;;  %v1677_v39 = vpop.permute.xlu1 %1676  ;;  %v1704_v7 = vadd.f32 %v1672_v18, %v4308_v59 }
 0x335   : > { %v4239_v32 = vpop.f32.mrf.mxu0 }
 0x337   : > { %v4241_v52 = vpop.f32.mrf.mxu1 }
 0x33d   : > { %v4243_v24 = vpop.f32.mrf.mxu0 }
 0x33f   : > { %v4245_v44 = vpop.f32.mrf.mxu1 }
 0x340   : > { %v1132_v37 = vadd.f32 %v4245_v44, %v3955_v54 }
 0x345   : > { %v4247_v55 = vpop.f32.mrf.mxu0 }
 0x346   : > { %v1105_v3 = vadd.f32 %v4247_v55, %v3966_v10 }
 0x347   : > { %v4251_v63 = vpop.f32.mrf.mxu1 }
 0x34d   : > { %v1107_v28 = vpop.f32.mrf.mxu0 }
 0x34e   : > { %v1108_v53 = vadd.f32 %v1107_v28, %v3961_v51 }
 0x34f   : > { %v4262_v34 = vpop.f32.mrf.mxu1 }
 0x350   : > { %v1137_v11 = vadd.f32 %v4262_v34, %v3961_v51  ;;  %v1100_v34 = vadd.f32 %v4239_v32, %v3963_v62 }
 0x355   : > { %v1109_v6 = vpop.f32.mrf.mxu0 }
 0x356   : > { %v1110_v27 = vadd.f32 %v1109_v6, %v3948_v5  ;;  %v4300_v6 = vpop.eup %3186 }
 0x357   : > { %v1138_v16 = vpop.f32.mrf.mxu1  ;;  %v4306_v36 = vpop.eup %3188 }
 0x358   : > { %v1150_v47 = vpack.c.bf16 %v1110_v27, %v1108_v53  ;;  %v4312_v28 = vpop.eup %3190  ;;  %v1139_v40 = vadd.f32 %v1138_v16, %v3948_v5  ;;  %v1103_v5 = vadd.f32 %v4243_v24, %v3955_v54  ;;  %v1134_v16 = vadd.f32 %v4251_v63, %v3966_v10  ;;  %v1588_v10 = vpop.permute.xlu2 %1587 }
 0x359   : > { %v4341_v24 = vpop.eup %3192  ;;  %v1621_v31 = vmul.f32 %v3977_v57, %v1588_v10  ;;  %v1622_v53 = vmul.f32 %v3979_v46, %v1588_v10 }
 0x35a   : > { %v1162_v49 = vunpack.c.l.bf16 %v1150_v47  ;;  %v1164_v27 = vunpack.c.h.bf16 %v1150_v47  ;;  %v1151_v55 = vpack.c.bf16 %v1139_v40, %v1137_v11  ;;  %v1148_v29 = vpack.c.bf16 %v1105_v3, %v1103_v5  ;;  %v1667_v5 = vpop.permute.xlu0 %1666 }
 0x35b   : > { %v1149_v32 = vpack.c.bf16 %v1134_v16, %v1132_v37  ;;  %v1637_v46 = vadd.f32 %v1621_v31, %v1568_v45  ;;  %v1635_v3 = vadd.f32 %v1619_v20, %v1566_v14 }
 0x35c   : > { %3194 = vtanh.f32 %v1162_v49  ;;  %v1165_v8 = vunpack.c.h.bf16 %v1151_v55  ;;  %v1636_v49 = vadd.f32 %v1620_v23, %v4318_v15  ;;  %v1732_v23 = vunpack.c.l.bf16 %v4316_v43 }
 0x35d   : > { %v1112_v25 = vpop.f32.mrf.mxu0  ;;  %3196 = vtanh.f32 %v1164_v27  ;;  %v1159_v40 = vunpack.c.l.bf16 %v1149_v32  ;;  %v1701_v59 = vadd.f32 %v1667_v5, %v1637_v46 }
 0x35e   : > { %v1113_v48 = vadd.f32 %v1112_v25, %v3935_v22  ;;  %v1641_v25 = vadd.f32 %v1625_v35, %v1572_v41  ;;  %v1160_v35 = vunpack.c.h.bf16 %v1148_v29 }
 0x35f   : > { %v1141_v2 = vpop.f32.mrf.mxu1 }
 0x360   : > { %v1142_v17 = vadd.f32 %v1141_v2, %v3935_v22  ;;  %v1098_v22 = vadd.f32 %v4234_v26, %v3957_v56  ;;  %v1163_v2 = vunpack.c.l.bf16 %v1151_v55  ;;  %v1158_v26 = vunpack.c.l.bf16 %v1148_v29  ;;  %v1662_v14 = vpop.permute.xlu2 %1661 }
 0x361   : > { %v1705_v13 = vadd.f32 %v1677_v39, %v1641_v25  ;;  %v1699_v55 = vadd.f32 %v1662_v14, %v1635_v3  ;;  %v1734_v29 = vunpack.c.h.bf16 %v4316_v43  ;;  %v1762_v3 = vpack.c.bf16 %v4312_v28, %v4300_v6 }
 0x362   : > { %v1146_v30 = vpack.c.bf16 %v1100_v34, %v1098_v22  ;;  %v3195_v47 = vpop.eup %3194  ;;  %v1700_v34 = vadd.f32 %v1662_v14, %v1636_v49  ;;  %v2987_v14 = vld [vmem:[%s4570_s3 + $0x10] sm:$0xff] }
 0x363   : > { %v3197_v57 = vpop.eup %3196 }
 0x364   : > { %v1154_v56 = vunpack.c.l.bf16 %v1146_v30 }
 0x365   : > { %v1114_v9 = vpop.f32.mrf.mxu0 }
 0x366   : > { %v1115_v12 = vadd.f32 %v1114_v9, %v3946_v50  ;;  %v1161_v9 = vunpack.c.h.bf16 %v1149_v32 }
 0x367   : > { %v1143_v33 = vpop.f32.mrf.mxu1 }
 0x368   : > { %v1152_v4 = vpack.c.bf16 %v1115_v12, %v1113_v48  ;;  %v1144_v51 = vadd.f32 %v1143_v33, %v3946_v50  ;;  %v1129_v50 = vadd.f32 %v4241_v52, %v3963_v62  ;;  %v1642_v62 = vadd.f32 %v1626_v60, %v1573_v21 }
 0x369   : > { %v1703_v52 = vadd.f32 %v1672_v18, %v1639_v38  ;;  %v1156_v21 = vunpack.c.h.bf16 %v1146_v30  ;;  %v1638_v60 = vadd.f32 %v1622_v53, %v4321_v19  ;;  %v1190_v18 = vpack.c.bf16 %v3197_v57, %v3195_v47 }
 0x36a   : > { %v1166_v63 = vunpack.c.l.bf16 %v1152_v4  ;;  %v1168_v0 = vunpack.c.h.bf16 %v1152_v4  ;;  %v1153_v61 = vpack.c.bf16 %v1144_v51, %v1142_v17  ;;  %v1147_v41 = vpack.c.bf16 %v1129_v50, %v1127_v1 }
 0x36b   : > { %v1706_v48 = vadd.f32 %v1677_v39, %v1642_v62  ;;  %v1717_v45 = vpack.c.bf16 %v1705_v13, %v1703_v52  ;;  %v1733_v17 = vunpack.c.h.bf16 %v4281_v42  ;;  %v1702_v25 = vadd.f32 %v1667_v5, %v1638_v60  ;;  %v2981_v13 = vld [vmem:[%s4570_s3 + $0x60] sm:$0xff]  ;;  %v2984_v5 = vld [vmem:[%s4570_s3 + $0x78] sm:$0xff] }
 0x36c   : > { %3198 = vtanh.f32 %v1166_v63  ;;  %v1167_v54 = vunpack.c.l.bf16 %v1153_v61  ;;  %v1169_v44 = vunpack.c.h.bf16 %v1153_v61  ;;  %v1155_v16 = vunpack.c.l.bf16 %v1147_v41 }
 0x36d   : > { %3200 = vtanh.f32 %v1168_v0  ;;  %v1157_v33 = vunpack.c.h.bf16 %v1147_v41  ;;  %v1718_v51 = vpack.c.bf16 %v1706_v48, %v1704_v7  ;;  %v1727_v63 = vunpack.c.l.bf16 %v1717_v45 }
 0x36e   : > { %3202 = vtanh.f32 %v1167_v54  ;;  %v1715_v0 = vpack.c.bf16 %v1701_v59, %v1699_v55  ;;  %v1729_v42 = vunpack.c.h.bf16 %v1717_v45  ;;  %v1761_v41 = vpack.c.bf16 %v4306_v36, %v4294_v58  ;;  %v2986_v45 = vld [vmem:[%s4570_s3 + $0x8] sm:$0xff] }
 0x36f   : > { %3204 = vtanh.f32 %v1169_v44  ;;  %v1728_v32 = vunpack.c.l.bf16 %v1718_v51  ;;  %v1730_v44 = vunpack.c.h.bf16 %v1718_v51 }
 0x370   : > { %3206 = vtanh.f32 %v1163_v2  ;;  %v1716_v2 = vpack.c.bf16 %v1702_v25, %v1700_v34  ;;  %v1723_v53 = vunpack.c.l.bf16 %v1715_v0  ;;  %v1725_v1 = vunpack.c.h.bf16 %v1715_v0  ;;  %v1245_v34 = vpop.permute.xlu1 %1244  ;;  %v1250_v25 = vpop.permute.xlu2 %1249 }
 0x371   : > { %3208 = vtanh.f32 %v1165_v8 }
 0x372   : > { %v3199_v11 = vpop.eup %3198  ;;  %3210 = vtanh.f32 %v1158_v26  ;;  %v1724_v39 = vunpack.c.l.bf16 %v1716_v2  ;;  %v1726_v52 = vunpack.c.h.bf16 %v1716_v2 }
 0x373   : > { %v3201_v38 = vpop.eup %3200  ;;  %3212 = vtanh.f32 %v1160_v35 }
 0x374   : > { %v3203_v12 = vpop.eup %3202  ;;  %3214 = vtanh.f32 %v1159_v40  ;;  %v1192_v20 = vpack.c.bf16 %v3201_v38, %v3199_v11 }
 0x375   : > { %v3205_v27 = vpop.eup %3204  ;;  %3216 = vtanh.f32 %v1161_v9 }
 0x376   : > { %v3207_v15 = vpop.eup %3206  ;;  %3218 = vtanh.f32 %v1154_v56  ;;  %1288 = vmatpush.bf16.msrb.mxu2 %v1192_v20  ;;  %v1193_v19 = vpack.c.bf16 %v3205_v27, %v3203_v12  ;;  %v2983_v12 = vld [vmem:[%s4570_s3 + $0x70] sm:$0xff]  ;;  %v2988_v20 = vld [vmem:[%s4570_s3 + $0x18] sm:$0xff] }
 0x377   : > { %v3209_v4 = vpop.eup %3208  ;;  %3220 = vtanh.f32 %v1156_v21 }
 0x378   : > { %v3211_v37 = vpop.eup %3210  ;;  %3222 = vtanh.f32 %v1155_v16  ;;  %1317 = vmatpush.bf16.msrb.mxu3 %v1193_v19  ;;  %v1191_v22 = vpack.c.bf16 %v3209_v4, %v3207_v15  ;;  %v2985_v16 = vld [vmem:[%s4570_s3] sm:$0xff]  ;;  %v1225_v0 = vpop.permute.xlu2 %1224 }
 0x379   : > { %v3213_v10 = vpop.eup %3212  ;;  %3224 = vtanh.f32 %v1157_v33 }
 0x37a   : > { %v3215_v61 = vpop.eup %3214  ;;  %3226 = vtanh.f32 %v1732_v23  ;;  %1289 = vmatpush.bf16.msrb.mxu2 %v1190_v18  ;;  %v1188_v43 = vpack.c.bf16 %v3213_v10, %v3211_v37  ;;  %v1235_v18 = vpop.permute.xlu0 %1234 }
 0x37b   : > { %v3217_v50 = vpop.eup %3216  ;;  %3228 = vtanh.f32 %v1733_v17  ;;  %v1240_v10 = vpop.permute.xlu1 %1239 }
 0x37c   : > { %v3219_v54 = vpop.eup %3218  ;;  %3230 = vtanh.f32 %v1734_v29  ;;  %1318 = vmatpush.bf16.msrb.mxu3 %v1191_v22  ;;  %v1189_v30 = vpack.c.bf16 %v3217_v50, %v3215_v61 }
 0x37d   : > { %v3221_v31 = vpop.eup %3220  ;;  %3232 = vtanh.f32 %v1727_v63 }
 0x37e   : > { %v3223_v8 = vpop.eup %3222  ;;  %3234 = vtanh.f32 %v1729_v42  ;;  %1290 = vmatpush.bf16.msrb.mxu2 %v1188_v43  ;;  %v1186_v35 = vpack.c.bf16 %v3221_v31, %v3219_v54 }
 0x37f   : > { %v3225_v26 = vpop.eup %3224  ;;  %3236 = vtanh.f32 %v1728_v32 }
 0x380   : > { %v3227_v62 = vpop.eup %3226  ;;  %3238 = vtanh.f32 %v1730_v44  ;;  %1319 = vmatpush.bf16.msrb.mxu3 %v1189_v30  ;;  %v1187_v57 = vpack.c.bf16 %v3225_v26, %v3223_v8 }
 0x381   : > { %v3229_v47 = vpop.eup %3228  ;;  %3240 = vtanh.f32 %v1723_v53 }
 0x382   : > { %v3231_v40 = vpop.eup %3230  ;;  %3242 = vtanh.f32 %v1725_v1  ;;  %1291 = vmatpush.bf16.msrb.mxu2 %v1186_v35  ;;  %v1759_v58 = vpack.c.bf16 %v3229_v47, %v4341_v24  ;;  %v2982_v24 = vld [vmem:[%s4570_s3 + $0x68] sm:$0xff]  ;;  %v1230_v32 = vpop.permute.xlu0 %1229 }
 0x383   : > { %v3233_v46 = vpop.eup %3232  ;;  %3244 = vtanh.f32 %v1724_v39  ;;  %v1760_v7 = vpack.c.bf16 %v3231_v40, %v3227_v62  ;;  %v1220_v62 = vpop.permute.xlu2 %1219 }
 0x384   : > { %v3235_v9 = vpop.eup %3234  ;;  %3246 = vtanh.f32 %v1726_v52  ;;  %1320 = vmatpush.bf16.msrb.mxu3 %v1187_v57 }
 0x385   : > { %v3237_v11 = vpop.eup %3236  ;;  %2805 = vmatmul.msk.bf16.vlgmr.msrb.gmra.mxu2 %vm683_vm0, %v2981_v13  ;;  %v1757_v49 = vpack.c.bf16 %v3235_v9, %v3233_v46  ;;  %v1215_v46 = vpop.permute.xlu1 %1214 }
 0x386   : > { %1855 = vmatpush.bf16.msra.mxu2 %v1761_v41  ;;  %v3239_v36 = vpop.eup %3238 }
 0x387   : > { %v3241_v56 = vpop.eup %3240  ;;  %2809 = vmatmul.msk.bf16.vlgmr.msrb.gmra.mxu3 %vm683_vm0, %v2981_v13  ;;  %v1758_v6 = vpack.c.bf16 %v3239_v36, %v3237_v11 }
 0x388   : > { %1884 = vmatpush.bf16.msra.mxu3 %v1762_v3  ;;  %v3243_v38 = vpop.eup %3242 }
 0x389   : > { %v3245_v21 = vpop.eup %3244  ;;  %v1755_v60 = vpack.c.bf16 %v3243_v38, %v3241_v56 }
 0x38a   : > { %1856 = vmatpush.bf16.msra.mxu2 %v1759_v58  ;;  %v3247_v28 = vpop.eup %3246 }
 0x38b   : > { %v1756_v48 = vpack.c.bf16 %v3247_v28, %v3245_v21 }
 0x38c   : > { %1885 = vmatpush.bf16.msra.mxu3 %v1760_v7 }
 0x38e   : > { %1857 = vmatpush.bf16.msra.mxu2 %v1757_v49 }
 0x390   : > { %1886 = vmatpush.bf16.msra.mxu3 %v1758_v6 }
 0x392   : > { %1858 = vmatpush.bf16.msra.mxu2 %v1755_v60 }
 0x394   : > { %1887 = vmatpush.bf16.msra.mxu3 %v1756_v48 }
 0x395   : > { %2806 = vmatmul.msk.bf16.gmra.mxu2 %vm683_vm0, %v2982_v24 }
 0x397   : > { %2810 = vmatmul.msk.bf16.gmra.mxu3 %vm683_vm0, %v2982_v24 }
 0x3a5   : > { %2807 = vmatmul.msk.bf16.gmra.mxu2 %vm683_vm0, %v2983_v12 }
 0x3a7   : > { %2811 = vmatmul.msk.bf16.gmra.mxu3 %vm683_vm0, %v2983_v12 }
 0x3b5   : > { %2808 = vmatmul.msk.bf16.gmra.mxu2 %vm683_vm0, %v2984_v5 }
 0x3b7   : > { %2812 = vmatmul.msk.bf16.gmra.mxu3 %vm683_vm0, %v2984_v5 }
 0x3c5   : > { %2834 = vmatmul.msk.bf16.vlgmr.msra.gmra.mxu2 %vm683_vm0, %v2985_v16 }
 0x3c7   : > { %2838 = vmatmul.msk.bf16.vlgmr.msra.gmra.mxu3 %vm683_vm0, %v2985_v16 }
 0x3d5   : > { %2835 = vmatmul.msk.bf16.gmra.mxu2 %vm683_vm0, %v2986_v45 }
 0x3d7   : > { %2839 = vmatmul.msk.bf16.gmra.mxu3 %vm683_vm0, %v2986_v45 }
 0x3e5   : > { %2836 = vmatmul.msk.bf16.gmra.mxu2 %vm683_vm0, %v2987_v14 }
 0x3e7   : > { %2840 = vmatmul.msk.bf16.gmra.mxu3 %vm683_vm0, %v2987_v14 }
 0x3f5   : > { %2837 = vmatmul.msk.bf16.gmra.mxu2 %vm683_vm0, %v2988_v20 }
 0x3f7   : > { %2841 = vmatmul.msk.bf16.gmra.mxu3 %vm683_vm0, %v2988_v20 }
 0x408   : > { %v1293_v27 = vpop.f32.mrf.mxu2 }
 0x409   : > { %v1294_v58 = vadd.f32 %v1293_v27, %v1215_v46 }
 0x40a   : > { %v1322_v33 = vpop.f32.mrf.mxu3 }
 0x40b   : > { %v1323_v28 = vadd.f32 %v1322_v33, %v1215_v46 }
 0x410   : > { %v1295_v55 = vpop.f32.mrf.mxu2 }
 0x411   : > { %v1296_v13 = vadd.f32 %v1295_v55, %v1220_v62 }
 0x412   : > { %v1324_v59 = vpop.f32.mrf.mxu3 }
 0x413   : > { %v1325_v36 = vadd.f32 %v1324_v59, %v1220_v62  ;;  %v1342_v60 = vpack.c.bf16 %v1296_v13, %v1294_v58  ;;  %v1802_v13 = vpop.permute.xlu2 %1801 }
 0x415   : > { %v1343_v16 = vpack.c.bf16 %v1325_v36, %v1323_v28  ;;  %v1350_v55 = vunpack.c.l.bf16 %v1342_v60 }
 0x418   : > { %v1298_v15 = vpop.f32.mrf.mxu2 }
 0x419   : > { %v1299_v1 = vadd.f32 %v1298_v15, %v1225_v0  ;;  %v1352_v15 = vunpack.c.h.bf16 %v1342_v60 }
 0x41a   : > { %v1327_v23 = vpop.f32.mrf.mxu3 }
 0x41b   : > { %v1328_v40 = vadd.f32 %v1327_v23, %v1225_v0  ;;  %v1351_v23 = vunpack.c.l.bf16 %v1343_v16  ;;  %v1797_v36 = vpop.permute.xlu2 %1796 }
 0x420   : > { %v1300_v17 = vpop.f32.mrf.mxu2 }
 0x421   : > { %v1301_v54 = vadd.f32 %v1300_v17, %v1230_v32 }
 0x422   : > { %v1329_v19 = vpop.f32.mrf.mxu3 }
 0x423   : > { %v1330_v30 = vadd.f32 %v1329_v19, %v1230_v32  ;;  %v1344_v57 = vpack.c.bf16 %v1301_v54, %v1299_v1  ;;  %v1390_v1 = vld [vmem:[%s4572_s5] sm:$0x1] }
 0x425   : > { %v1345_v56 = vpack.c.bf16 %v1330_v30, %v1328_v40  ;;  %v1354_v48 = vunpack.c.l.bf16 %v1344_v57  ;;  %v1356_v24 = vunpack.c.h.bf16 %v1344_v57 }
 0x427   : > { %v1355_v45 = vunpack.c.l.bf16 %v1345_v56  ;;  %v1357_v20 = vunpack.c.h.bf16 %v1345_v56 }
 0x428   : > { %v1303_v4 = vpop.f32.mrf.mxu2 }
 0x429   : > { %v1304_v22 = vadd.f32 %v1303_v4, %v1235_v18  ;;  %v1353_v4 = vunpack.c.h.bf16 %v1343_v16 }
 0x42a   : > { %v1332_v51 = vpop.f32.mrf.mxu3 }
 0x42b   : > { %v1333_v43 = vadd.f32 %v1332_v51, %v1235_v18 }
 0x430   : > { %v1305_v37 = vpop.f32.mrf.mxu2 }
 0x431   : > { %v1306_v61 = vadd.f32 %v1305_v37, %v1240_v10 }
 0x432   : > { %v1334_v29 = vpop.f32.mrf.mxu3 }
 0x433   : > { %v1346_v50 = vpack.c.bf16 %v1306_v61, %v1304_v22  ;;  %v1335_v2 = vadd.f32 %v1334_v29, %v1240_v10 }
 0x435   : > { %v1358_v31 = vunpack.c.l.bf16 %v1346_v50  ;;  %v1360_v26 = vunpack.c.h.bf16 %v1346_v50  ;;  %v1347_v52 = vpack.c.bf16 %v1335_v2, %v1333_v43 }
 0x437   : > { %3248 = vtanh.f32 %v1358_v31  ;;  %v1359_v7 = vunpack.c.l.bf16 %v1347_v52  ;;  %v1361_v21 = vunpack.c.h.bf16 %v1347_v52  ;;  %v1812_v52 = vpop.permute.xlu0 %1811 }
 0x438   : > { %v1308_v63 = vpop.f32.mrf.mxu2  ;;  %3250 = vtanh.f32 %v1360_v26 }
 0x439   : > { %v1309_v53 = vadd.f32 %v1308_v63, %v1245_v34 }
 0x43a   : > { %v1337_v42 = vpop.f32.mrf.mxu3 }
 0x43b   : > { %v1338_v35 = vadd.f32 %v1337_v42, %v1245_v34 }
 0x43d   : > { %v3249_v5 = vpop.eup %3248 }
 0x43e   : > { %v3251_v14 = vpop.eup %3250 }
 0x43f   : > { %v1386_v10 = vpack.c.bf16 %v3251_v14, %v3249_v5  ;;  %v1807_v40 = vpop.permute.xlu0 %1806 }
 0x440   : > { %v1310_v44 = vpop.f32.mrf.mxu2 }
 0x441   : > { %v1311_v8 = vadd.f32 %v1310_v44, %v1250_v25 }
 0x442   : > { %v1339_v39 = vpop.f32.mrf.mxu3 }
 0x443   : > { %v1348_v47 = vpack.c.bf16 %v1311_v8, %v1309_v53  ;;  %v1340_v41 = vadd.f32 %v1339_v39, %v1250_v25 }
 0x445   : > { %v1362_v3 = vunpack.c.l.bf16 %v1348_v47  ;;  %v1364_v9 = vunpack.c.h.bf16 %v1348_v47  ;;  %v1349_v11 = vpack.c.bf16 %v1340_v41, %v1338_v35  ;;  %v1817_v35 = vpop.permute.xlu1 %1816 }
 0x447   : > { %3252 = vtanh.f32 %v1362_v3  ;;  %v1363_v49 = vunpack.c.l.bf16 %v1349_v11  ;;  %v1365_v38 = vunpack.c.h.bf16 %v1349_v11 }
 0x448   : > { %3254 = vtanh.f32 %v1364_v9  ;;  %v4402_v6 = vpop.f32.mrf.mxu2 }
 0x449   : > { %3256 = vtanh.f32 %v1363_v49 }
 0x44a   : > { %3258 = vtanh.f32 %v1365_v38  ;;  %v4404_v12 = vpop.f32.mrf.mxu3 }
 0x44b   : > { %3260 = vtanh.f32 %v1359_v7 }
 0x44c   : > { %3262 = vtanh.f32 %v1361_v21 }
 0x44d   : > { %v3253_v27 = vpop.eup %3252  ;;  %3264 = vtanh.f32 %v1354_v48  ;;  %v1792_v46 = vpop.permute.xlu1 %1791 }
 0x44e   : > { %v3255_v59 = vpop.eup %3254  ;;  %3266 = vtanh.f32 %v1356_v24 }
 0x44f   : > { %v3257_v33 = vpop.eup %3256  ;;  %3268 = vtanh.f32 %v1355_v45  ;;  %v1388_v17 = vpack.c.bf16 %v3255_v59, %v3253_v27 }
 0x450   : > { %v3259_v19 = vpop.eup %3258  ;;  %3270 = vtanh.f32 %v1357_v20  ;;  %v4406_v51 = vpop.f32.mrf.mxu2 }
 0x451   : > { %v3261_v34 = vpop.eup %3260  ;;  %3272 = vtanh.f32 %v1350_v55  ;;  %1405 = vmatpush.bf16.msra.mxu0 %v1388_v17  ;;  %v1389_v25 = vpack.c.bf16 %v3259_v19, %v3257_v33 }
 0x452   : > { %v3263_v37 = vpop.eup %3262  ;;  %3274 = vtanh.f32 %v1352_v15  ;;  %v4408_v29 = vpop.f32.mrf.mxu3 }
 0x453   : > { %v3265_v18 = vpop.eup %3264  ;;  %3276 = vtanh.f32 %v1351_v23  ;;  %1418 = vmatpush.bf16.msra.mxu1 %v1389_v25  ;;  %v1387_v61 = vpack.c.bf16 %v3263_v37, %v3261_v34  ;;  %v1782_v23 = vpop.permute.xlu0 %1781 }
 0x454   : > { %v3267_v63 = vpop.eup %3266  ;;  %3278 = vtanh.f32 %v1353_v4  ;;  %v1861_v34 = vadd.f32 %v4402_v6, %v1782_v23 }
 0x455   : > { %v3269_v0 = vpop.eup %3268  ;;  %1406 = vmatpush.bf16.msra.mxu0 %v1386_v10  ;;  %v1384_v50 = vpack.c.bf16 %v3267_v63, %v3265_v18  ;;  %v1787_v45 = vpop.permute.xlu1 %1786 }
 0x456   : > { %v3271_v42 = vpop.eup %3270  ;;  %v1863_v59 = vadd.f32 %v4406_v51, %v1787_v45  ;;  %v1892_v25 = vadd.f32 %v4408_v29, %v1787_v45  ;;  %v1890_v51 = vadd.f32 %v4404_v12, %v1782_v23  ;;  %v2992_v45 = vld [vmem:[%s4570_s3 + $0x38] sm:$0xff] }
 0x457   : > { %v3273_v22 = vpop.eup %3272  ;;  %1419 = vmatpush.bf16.msra.mxu1 %v1387_v61  ;;  %v1385_v44 = vpack.c.bf16 %v3271_v42, %v3269_v0 }
 0x458   : > { %v3275_v32 = vpop.eup %3274  ;;  %v1865_v2 = vpop.f32.mrf.mxu2  ;;  %v1909_v61 = vpack.c.bf16 %v1863_v59, %v1861_v34  ;;  %v1910_v6 = vpack.c.bf16 %v1892_v25, %v1890_v51  ;;  %v1433_v59 = vlaneseq }
 0x459   : > { %v3277_v54 = vpop.eup %3276  ;;  %1407 = vmatpush.bf16.msra.mxu0 %v1384_v50  ;;  %v1382_v53 = vpack.c.bf16 %v3275_v32, %v3273_v22  ;;  %v1866_v48 = vadd.f32 %v1865_v2, %v1792_v46  ;;  %v4419_v32 = vpop.permute.xlu2 %2005 }
 0x45a   : > { %v3279_v43 = vpop.eup %3278  ;;  %v1894_v31 = vpop.f32.mrf.mxu3  ;;  %vm4458_vm2 = vcmp.lt.s32.totalorder %v1433_v59, 256 }
 0x45b   : > { %1420 = vmatpush.bf16.msra.mxu1 %v1385_v44  ;;  %v1383_v8 = vpack.c.bf16 %v3279_v43, %v3277_v54  ;;  %v1895_v15 = vadd.f32 %v1894_v31, %v1792_v46  ;;  %v1917_v43 = vunpack.c.l.bf16 %v1909_v61 }
 0x45d   : > { %1408 = vmatpush.bf16.msra.mxu0 %v1382_v53  ;;  %v1919_v53 = vunpack.c.h.bf16 %v1909_v61 }
 0x45f   : > { %1421 = vmatpush.bf16.msra.mxu1 %v1383_v8  ;;  %v1918_v8 = vunpack.c.l.bf16 %v1910_v6 }
 0x460   : > { %2813 = vmatmul.msk.bf16.vlgmr.msra.gmra.mxu0 %vm683_vm0, %v1390_v1  ;;  %v1867_v30 = vpop.f32.mrf.mxu2 }
 0x461   : > { %v1868_v7 = vadd.f32 %v1867_v30, %v1797_v36 }
 0x462   : > { %2814 = vmatmul.msk.bf16.vlgmr.msra.gmra.mxu1 %vm683_vm0, %v1390_v1  ;;  %v1896_v26 = vpop.f32.mrf.mxu3 }
 0x463   : > { %v1897_v24 = vadd.f32 %v1896_v26, %v1797_v36  ;;  %v1911_v33 = vpack.c.bf16 %v1868_v7, %v1866_v48  ;;  %v1920_v26 = vunpack.c.h.bf16 %v1910_v6  ;;  %v2011_v6 = vpop.permute.xlu0 %2010 }
 0x465   : > { %v1912_v37 = vpack.c.bf16 %v1897_v24, %v1895_v15  ;;  %v1921_v42 = vunpack.c.l.bf16 %v1911_v33  ;;  %v1923_v22 = vunpack.c.h.bf16 %v1911_v33  ;;  %v2991_v24 = vld [vmem:[%s4570_s3 + $0x30] sm:$0xff] }
 0x467   : > { %v1922_v29 = vunpack.c.l.bf16 %v1912_v37  ;;  %v1924_v54 = vunpack.c.h.bf16 %v1912_v37 }
 0x468   : > { %v1870_v39 = vpop.f32.mrf.mxu2 }
 0x469   : > { %v1871_v11 = vadd.f32 %v1870_v39, %v1802_v13 }
 0x46a   : > { %v1899_v62 = vpop.f32.mrf.mxu3 }
 0x46b   : > { %v1900_v38 = vadd.f32 %v1899_v62, %v1802_v13 }
 0x470   : > { %v1872_v47 = vpop.f32.mrf.mxu2 }
 0x471   : > { %v1873_v3 = vadd.f32 %v1872_v47, %v1807_v40 }
 0x472   : > { %v1901_v41 = vpop.f32.mrf.mxu3 }
 0x473   : > { %v1913_v58 = vpack.c.bf16 %v1873_v3, %v1871_v11  ;;  %v1902_v56 = vadd.f32 %v1901_v41, %v1807_v40  ;;  %v4421_v40 = vpop.permute.xlu2 %2000 }
 0x475   : > { %v1925_v21 = vunpack.c.l.bf16 %v1913_v58  ;;  %v1927_v5 = vunpack.c.h.bf16 %v1913_v58  ;;  %v1914_v14 = vpack.c.bf16 %v1902_v56, %v1900_v38 }
 0x477   : > { %3280 = vtanh.f32 %v1925_v21  ;;  %v1926_v18 = vunpack.c.l.bf16 %v1914_v14  ;;  %v1928_v0 = vunpack.c.h.bf16 %v1914_v14 }
 0x478   : > { %v1875_v57 = vpop.f32.mrf.mxu2  ;;  %3282 = vtanh.f32 %v1927_v5 }
 0x479   : > { %v1876_v28 = vadd.f32 %v1875_v57, %v1812_v52 }
 0x47a   : > { %v1904_v9 = vpop.f32.mrf.mxu3 }
 0x47b   : > { %v1905_v20 = vadd.f32 %v1904_v9, %v1812_v52  ;;  %v4426_v21 = vpop.permute.xlu2 %1975 }
 0x47d   : > { %v3281_v50 = vpop.eup %3280 }
 0x47e   : > { %v3283_v2 = vpop.eup %3282 }
 0x47f   : > { %v1953_v47 = vpack.c.bf16 %v3283_v2, %v3281_v50 }
 0x480   : > { %v1877_v49 = vpop.f32.mrf.mxu2 }
 0x481   : > { %v1878_v60 = vadd.f32 %v1877_v49, %v1817_v35  ;;  %v2989_v49 = vld [vmem:[%s4570_s3 + $0x20] sm:$0xff] }
 0x482   : > { %v1906_v16 = vpop.f32.mrf.mxu3 }
 0x483   : > { %v1915_v27 = vpack.c.bf16 %v1878_v60, %v1876_v28  ;;  %v1907_v55 = vadd.f32 %v1906_v16, %v1817_v35  ;;  %v4430_v28 = vpop.permute.xlu2 %2204  ;;  %v2990_v60 = vld [vmem:[%s4570_s3 + $0x28] sm:$0xff] }
 0x485   : > { %v1929_v17 = vunpack.c.l.bf16 %v1915_v27  ;;  %v1931_v19 = vunpack.c.h.bf16 %v1915_v27  ;;  %v1916_v4 = vpack.c.bf16 %v1907_v55, %v1905_v20 }
 0x487   : > { %3284 = vtanh.f32 %v1929_v17  ;;  %v1930_v10 = vunpack.c.l.bf16 %v1916_v4  ;;  %v1932_v63 = vunpack.c.h.bf16 %v1916_v4 }
 0x488   : > { %3286 = vtanh.f32 %v1931_v19 }
 0x489   : > { %3288 = vtanh.f32 %v1930_v10 }
 0x48a   : > { %3290 = vtanh.f32 %v1932_v63 }
 0x48b   : > { %3292 = vtanh.f32 %v1926_v18  ;;  %v4437_v48 = vpop.permute.xlu2 %2179 }
 0x48c   : > { %3294 = vtanh.f32 %v1928_v0 }
 0x48d   : > { %v3285_v44 = vpop.eup %3284  ;;  %3296 = vtanh.f32 %v1921_v42 }
 0x48e   : > { %v3287_v31 = vpop.eup %3286  ;;  %3298 = vtanh.f32 %v1923_v22 }
 0x48f   : > { %v3289_v12 = vpop.eup %3288  ;;  %3300 = vtanh.f32 %v1922_v29  ;;  %v1955_v1 = vpack.c.bf16 %v3287_v31, %v3285_v44 }
 0x490   : > { %v3291_v30 = vpop.eup %3290  ;;  %3302 = vtanh.f32 %v1924_v54  ;;  %v1996_v54 = vpop.permute.xlu1 %1995 }
 0x491   : > { %v3293_v39 = vpop.eup %3292  ;;  %3304 = vtanh.f32 %v1917_v43  ;;  %2049 = vmatpush.bf16.msrb.mxu0 %v1955_v1  ;;  %v1956_v62 = vpack.c.bf16 %v3291_v30, %v3289_v12  ;;  %v1986_v43 = vpop.permute.xlu0 %1985 }
 0x492   : > { %v3295_v52 = vpop.eup %3294  ;;  %3306 = vtanh.f32 %v1919_v53 }
 0x493   : > { %v3297_v35 = vpop.eup %3296  ;;  %3308 = vtanh.f32 %v1918_v8  ;;  %2078 = vmatpush.bf16.msrb.mxu1 %v1956_v62  ;;  %v1954_v57 = vpack.c.bf16 %v3295_v52, %v3293_v39  ;;  %v4442_v5 = vpop.permute.xlu2 %2174 }
 0x494   : > { %v3299_v41 = vpop.eup %3298  ;;  %3310 = vtanh.f32 %v1920_v26 }
 0x495   : > { %v3301_v13 = vpop.eup %3300  ;;  %2050 = vmatpush.bf16.msrb.mxu0 %v1953_v47  ;;  %v1951_v9 = vpack.c.bf16 %v3299_v41, %v3297_v35 }
 0x496   : > { %v3303_v46 = vpop.eup %3302 }
 0x497   : > { %v3305_v3 = vpop.eup %3304  ;;  %2079 = vmatpush.bf16.msrb.mxu1 %v1954_v57  ;;  %v1952_v36 = vpack.c.bf16 %v3303_v46, %v3301_v13 }
 0x498   : > { %v3307_v11 = vpop.eup %3306  ;;  %v1991_v1 = vpop.permute.xlu1 %1990 }
 0x499   : > { %v3309_v58 = vpop.eup %3308  ;;  %2051 = vmatpush.bf16.msrb.mxu0 %v1951_v9  ;;  %v1949_v7 = vpack.c.bf16 %v3307_v11, %v3305_v3  ;;  %v1981_v3 = vpop.permute.xlu0 %1980 }
 0x49a   : > { %v3311_v56 = vpop.eup %3310 }
 0x49b   : > { %2080 = vmatpush.bf16.msrb.mxu1 %v1952_v36  ;;  %v1950_v38 = vpack.c.bf16 %v3311_v56, %v3309_v58  ;;  %v4446_v16 = vpop.permute.xlu2 %2383 }
 0x49d   : > { %2052 = vmatpush.bf16.msrb.mxu0 %v1949_v7 }
 0x49f   : > { %2081 = vmatpush.bf16.msrb.mxu1 %v1950_v38 }
 0x4a0   : > { %2874 = vmatmul.msk.bf16.vlgmr.msrb.gmra.mxu0 %vm683_vm0, %v2989_v49 }
 0x4a2   : > { %2878 = vmatmul.msk.bf16.vlgmr.msrb.gmra.mxu1 %vm683_vm0, %v2989_v49 }
 0x4a3   : > { %v4452_v14 = vpop.permute.xlu2 %2378 }
 0x4ab   : > { %v1395_v20 = vpop.permute.xlu2 %1394 }
 0x4ac   : > { %v1397_v55 = vperm.slane %v1395_v20, 0 }
 0x4b0   : > { %2875 = vmatmul.msk.bf16.gmra.mxu0 %vm683_vm0, %v2990_v60 }
 0x4b2   : > { %2879 = vmatmul.msk.bf16.gmra.mxu1 %vm683_vm0, %v2990_v60 }
 0x4c0   : > { %2876 = vmatmul.msk.bf16.gmra.mxu0 %vm683_vm0, %v2991_v24 }
 0x4c2   : > { %2880 = vmatmul.msk.bf16.gmra.mxu1 %vm683_vm0, %v2991_v24 }
 0x4d0   : > { %2877 = vmatmul.msk.bf16.gmra.mxu0 %vm683_vm0, %v2992_v45 }
 0x4d2   : > { %2881 = vmatmul.msk.bf16.gmra.mxu1 %vm683_vm0, %v2992_v45 }
 0x4dd   : > { %v1410_v27 = vpop.f32.mrf.mxu0 }
 0x4de   : > { %v1411_v23 = vadd.f32 %v1410_v27, %v1397_v55 }
 0x4df   : > { %v1423_v15 = vpop.f32.mrf.mxu1 }
 0x4e0   : > { %v1424_v33 = vadd.f32 %v1423_v15, %v1397_v55 }
 0x4e2   : > { %v1429_v17 = vrot.slane %v1424_v33, 7 }
 0x4e4   : > { %v1431_v4 = vsel %vm1430_vm1, %v1411_v23, %v1429_v17 }
 0x4e5   : > { %v1412_v34 = vpop.f32.mrf.mxu0  ;;  %1437 = vst.msk [vmem:[%s4463_s23] sm:$0x3] %vm4458_vm2, %v1431_v4 }
 0x4e7   : > { %v1425_v25 = vpop.f32.mrf.mxu1 }
 0x51d   : > { %v2054_v37 = vpop.f32.mrf.mxu0 }
 0x51e   : > { %v2055_v24 = vadd.f32 %v2054_v37, %v4426_v21 }
 0x51f   : > { %v2083_v18 = vpop.f32.mrf.mxu1 }
 0x525   : > { %v2056_v10 = vpop.f32.mrf.mxu0 }
 0x526   : > { %v2057_v56 = vadd.f32 %v2056_v10, %v1981_v3 }
 0x527   : > { %v2085_v63 = vpop.f32.mrf.mxu1 }
 0x528   : > { %v2086_v45 = vadd.f32 %v2085_v63, %v1981_v3  ;;  %v2103_v33 = vpack.c.bf16 %v2057_v56, %v2055_v24 }
 0x52d   : > { %v2059_v0 = vpop.f32.mrf.mxu0 }
 0x52e   : > { %v2060_v41 = vadd.f32 %v2059_v0, %v1986_v43  ;;  %v2111_v0 = vunpack.c.l.bf16 %v2103_v33 }
 0x52f   : > { %v2088_v51 = vpop.f32.mrf.mxu1 }
 0x530   : > { %v2089_v7 = vadd.f32 %v2088_v51, %v1986_v43 }
 0x535   : > { %v2061_v61 = vpop.f32.mrf.mxu0 }
 0x536   : > { %v2062_v26 = vadd.f32 %v2061_v61, %v1991_v1  ;;  %v2113_v61 = vunpack.c.h.bf16 %v2103_v33 }
 0x537   : > { %v2090_v42 = vpop.f32.mrf.mxu1 }
 0x538   : > { %v2091_v13 = vadd.f32 %v2090_v42, %v1991_v1 }
 0x53a   : > { %v2106_v20 = vpack.c.bf16 %v2091_v13, %v2089_v7  ;;  %v2995_v13 = vld [vmem:[%s4570_s3 + $0x50] sm:$0xff] }
 0x53c   : > { %v2116_v25 = vunpack.c.l.bf16 %v2106_v20  ;;  %v2118_v10 = vunpack.c.h.bf16 %v2106_v20 }
 0x53d   : > { %v2064_v22 = vpop.f32.mrf.mxu0 }
 0x53e   : > { %v2065_v12 = vadd.f32 %v2064_v22, %v1996_v54 }
 0x53f   : > { %v2093_v50 = vpop.f32.mrf.mxu1 }
 0x540   : > { %v2094_v62 = vadd.f32 %v2093_v50, %v1996_v54 }
 0x545   : > { %v2066_v29 = vpop.f32.mrf.mxu0 }
 0x546   : > { %v2067_v31 = vadd.f32 %v2066_v29, %v4421_v40 }
 0x547   : > { %v2095_v2 = vpop.f32.mrf.mxu1 }
 0x548   : > { %v2107_v8 = vpack.c.bf16 %v2067_v31, %v2065_v12  ;;  %v2096_v30 = vadd.f32 %v2095_v2, %v4421_v40  ;;  %v2105_v40 = vpack.c.bf16 %v2062_v26, %v2060_v41  ;;  %v2994_v41 = vld [vmem:[%s4570_s3 + $0x48] sm:$0xff] }
 0x54a   : > { %v2119_v52 = vunpack.c.l.bf16 %v2107_v8  ;;  %v2121_v57 = vunpack.c.h.bf16 %v2107_v8  ;;  %v2108_v9 = vpack.c.bf16 %v2096_v30, %v2094_v62  ;;  %v2115_v23 = vunpack.c.l.bf16 %v2105_v40 }
 0x54b   : > { %v2117_v17 = vunpack.c.h.bf16 %v2105_v40 }
 0x54c   : > { %3312 = vtanh.f32 %v2119_v52  ;;  %v2120_v27 = vunpack.c.l.bf16 %v2108_v9  ;;  %v2122_v15 = vunpack.c.h.bf16 %v2108_v9 }
 0x54d   : > { %v2069_v44 = vpop.f32.mrf.mxu0  ;;  %3314 = vtanh.f32 %v2121_v57  ;;  %v2996_v57 = vld [vmem:[%s4570_s3 + $0x58] sm:$0xff] }
 0x54e   : > { %v2070_v35 = vadd.f32 %v2069_v44, %v4419_v32 }
 0x54f   : > { %v2098_v53 = vpop.f32.mrf.mxu1 }
 0x550   : > { %v2099_v11 = vadd.f32 %v2098_v53, %v4419_v32  ;;  %v2084_v32 = vadd.f32 %v2083_v18, %v4426_v21 }
 0x552   : > { %v3313_v4 = vpop.eup %3312  ;;  %v2104_v34 = vpack.c.bf16 %v2086_v45, %v2084_v32  ;;  %v2190_v45 = vpop.permute.xlu0 %2189 }
 0x553   : > { %v3315_v37 = vpop.eup %3314 }
 0x554   : > { %v2112_v21 = vunpack.c.l.bf16 %v2104_v34  ;;  %v2114_v50 = vunpack.c.h.bf16 %v2104_v34  ;;  %v2147_v44 = vpack.c.bf16 %v3315_v37, %v3313_v4 }
 0x555   : > { %v2071_v39 = vpop.f32.mrf.mxu0 }
 0x556   : > { %v2072_v47 = vadd.f32 %v2071_v39, %v2011_v6 }
 0x557   : > { %v2100_v46 = vpop.f32.mrf.mxu1 }
 0x558   : > { %v2109_v58 = vpack.c.bf16 %v2072_v47, %v2070_v35  ;;  %v2101_v36 = vadd.f32 %v2100_v46, %v2011_v6  ;;  %v2993_v35 = vld [vmem:[%s4570_s3 + $0x40] sm:$0xff] }
 0x55a   : > { %v2123_v49 = vunpack.c.l.bf16 %v2109_v58  ;;  %v2125_v38 = vunpack.c.h.bf16 %v2109_v58  ;;  %v2110_v60 = vpack.c.bf16 %v2101_v36, %v2099_v11  ;;  %v2185_v33 = vpop.permute.xlu0 %2184 }
 0x55c   : > { %3316 = vtanh.f32 %v2123_v49  ;;  %v2124_v55 = vunpack.c.l.bf16 %v2110_v60  ;;  %v2126_v59 = vunpack.c.h.bf16 %v2110_v60 }
 0x55d   : > { %3318 = vtanh.f32 %v2125_v38  ;;  %v2200_v38 = vpop.permute.xlu1 %2199 }
 0x55e   : > { %3320 = vtanh.f32 %v2124_v55 }
 0x55f   : > { %3322 = vtanh.f32 %v2126_v59 }
 0x560   : > { %3324 = vtanh.f32 %v2120_v27 }
 0x561   : > { %3326 = vtanh.f32 %v2122_v15 }
 0x562   : > { %v3317_v63 = vpop.eup %3316  ;;  %3328 = vtanh.f32 %v2115_v23 }
 0x563   : > { %v3319_v51 = vpop.eup %3318  ;;  %3330 = vtanh.f32 %v2117_v17 }
 0x564   : > { %v3321_v42 = vpop.eup %3320  ;;  %3332 = vtanh.f32 %v2116_v25  ;;  %v2149_v18 = vpack.c.bf16 %v3319_v51, %v3317_v63 }
 0x565   : > { %v3323_v22 = vpop.eup %3322  ;;  %3334 = vtanh.f32 %v2118_v10  ;;  %v2195_v20 = vpop.permute.xlu1 %2194 }
 0x566   : > { %v3325_v6 = vpop.eup %3324  ;;  %3336 = vtanh.f32 %v2111_v0  ;;  %2243 = vmatpush.bf16.msrb.mxu2 %v2149_v18  ;;  %v2150_v29 = vpack.c.bf16 %v3323_v22, %v3321_v42 }
 0x567   : > { %v3327_v2 = vpop.eup %3326  ;;  %3338 = vtanh.f32 %v2113_v61 }
 0x568   : > { %v3329_v54 = vpop.eup %3328  ;;  %3340 = vtanh.f32 %v2112_v21  ;;  %2272 = vmatpush.bf16.msrb.mxu3 %v2150_v29  ;;  %v2148_v53 = vpack.c.bf16 %v3327_v2, %v3325_v6 }
 0x569   : > { %v3331_v43 = vpop.eup %3330  ;;  %3342 = vtanh.f32 %v2114_v50 }
 0x56a   : > { %v3333_v31 = vpop.eup %3332  ;;  %2244 = vmatpush.bf16.msrb.mxu2 %v2147_v44  ;;  %v2145_v1 = vpack.c.bf16 %v3331_v43, %v3329_v54 }
 0x56b   : > { %v3335_v12 = vpop.eup %3334 }
 0x56c   : > { %v3337_v8 = vpop.eup %3336  ;;  %2273 = vmatpush.bf16.msrb.mxu3 %v2148_v53  ;;  %v2146_v39 = vpack.c.bf16 %v3335_v12, %v3333_v31 }
 0x56d   : > { %v3339_v30 = vpop.eup %3338  ;;  %v2170_v2 = vpop.permute.xlu1 %2169 }
 0x56e   : > { %v3341_v26 = vpop.eup %3340  ;;  %2245 = vmatpush.bf16.msrb.mxu2 %v2145_v1  ;;  %v2143_v52 = vpack.c.bf16 %v3339_v30, %v3337_v8 }
 0x56f   : > { %v3343_v62 = vpop.eup %3342 }
 0x570   : > { %2274 = vmatpush.bf16.msrb.mxu3 %v2146_v39  ;;  %v2144_v47 = vpack.c.bf16 %v3343_v62, %v3341_v26 }
 0x572   : > { %2246 = vmatpush.bf16.msrb.mxu2 %v2143_v52 }
 0x574   : > { %2275 = vmatpush.bf16.msrb.mxu3 %v2144_v47 }
 0x575   : > { %2914 = vmatmul.msk.bf16.vlgmr.msrb.gmra.mxu2 %vm683_vm0, %v2993_v35 }
 0x577   : > { %2918 = vmatmul.msk.bf16.vlgmr.msrb.gmra.mxu3 %vm683_vm0, %v2993_v35 }
 0x585   : > { %2915 = vmatmul.msk.bf16.gmra.mxu2 %vm683_vm0, %v2994_v41 }
 0x587   : > { %2919 = vmatmul.msk.bf16.gmra.mxu3 %vm683_vm0, %v2994_v41 }
 0x595   : > { %2916 = vmatmul.msk.bf16.gmra.mxu2 %vm683_vm0, %v2995_v13 }
 0x597   : > { %2920 = vmatmul.msk.bf16.gmra.mxu3 %vm683_vm0, %v2995_v13 }
 0x5a5   : > { %2917 = vmatmul.msk.bf16.gmra.mxu2 %vm683_vm0, %v2996_v57 }
 0x5a7   : > { %2921 = vmatmul.msk.bf16.gmra.mxu3 %vm683_vm0, %v2996_v57 }
 0x5f8   : > { %v2248_v46 = vpop.f32.mrf.mxu2 }
 0x5f9   : > { %v2249_v31 = vadd.f32 %v2248_v46, %v2170_v2 }
 0x5fa   : > { %v2277_v3 = vpop.f32.mrf.mxu3 }
 0x5fb   : > { %v2278_v26 = vadd.f32 %v2277_v3, %v2170_v2  ;;  %v2399_v2 = vpop.permute.xlu1 %2398 }
 0x600   : > { %v2250_v9 = vpop.f32.mrf.mxu2 }
 0x601   : > { %v2251_v50 = vadd.f32 %v2250_v9, %v4442_v5 }
 0x602   : > { %v2279_v11 = vpop.f32.mrf.mxu3 }
 0x603   : > { %v2280_v53 = vadd.f32 %v2279_v11, %v4442_v5  ;;  %v2297_v39 = vpack.c.bf16 %v2251_v50, %v2249_v31 }
 0x605   : > { %v2298_v35 = vpack.c.bf16 %v2280_v53, %v2278_v26  ;;  %v2305_v57 = vunpack.c.l.bf16 %v2297_v39  ;;  %v2307_v9 = vunpack.c.h.bf16 %v2297_v39  ;;  %v2374_v53 = vpop.permute.xlu1 %2373 }
 0x607   : > { %v2306_v3 = vunpack.c.l.bf16 %v2298_v35 }
 0x608   : > { %v2253_v58 = vpop.f32.mrf.mxu2 }
 0x609   : > { %v2254_v63 = vadd.f32 %v2253_v58, %v4437_v48 }
 0x60a   : > { %v2282_v36 = vpop.f32.mrf.mxu3 }
 0x60b   : > { %v2283_v6 = vadd.f32 %v2282_v36, %v4437_v48 }
 0x610   : > { %v2255_v56 = vpop.f32.mrf.mxu2 }
 0x611   : > { %v2256_v17 = vadd.f32 %v2255_v56, %v2185_v33  ;;  %v2308_v56 = vunpack.c.h.bf16 %v2298_v35 }
 0x612   : > { %v2284_v7 = vpop.f32.mrf.mxu3 }
 0x613   : > { %v2285_v0 = vadd.f32 %v2284_v7, %v2185_v33  ;;  %v2299_v29 = vpack.c.bf16 %v2256_v17, %v2254_v63 }
 0x615   : > { %v2300_v12 = vpack.c.bf16 %v2285_v0, %v2283_v6  ;;  %v2309_v48 = vunpack.c.l.bf16 %v2299_v29  ;;  %v2311_v62 = vunpack.c.h.bf16 %v2299_v29  ;;  %v2394_v29 = vpop.permute.xlu0 %2393 }
 0x617   : > { %v2310_v47 = vunpack.c.l.bf16 %v2300_v12  ;;  %v2312_v5 = vunpack.c.h.bf16 %v2300_v12 }
 0x618   : > { %v2258_v40 = vpop.f32.mrf.mxu2 }
 0x619   : > { %v2259_v15 = vadd.f32 %v2258_v40, %v2190_v45 }
 0x61a   : > { %v2287_v49 = vpop.f32.mrf.mxu3 }
 0x61b   : > { %v2288_v34 = vadd.f32 %v2287_v49, %v2190_v45 }
 0x620   : > { %v2260_v60 = vpop.f32.mrf.mxu2 }
 0x621   : > { %v2261_v55 = vadd.f32 %v2260_v60, %v2195_v20 }
 0x622   : > { %v2289_v24 = vpop.f32.mrf.mxu3 }
 0x623   : > { %v2301_v32 = vpack.c.bf16 %v2261_v55, %v2259_v15  ;;  %v2290_v23 = vadd.f32 %v2289_v24, %v2195_v20 }
 0x625   : > { %v2313_v25 = vunpack.c.l.bf16 %v2301_v32  ;;  %v2315_v51 = vunpack.c.h.bf16 %v2301_v32  ;;  %v2302_v42 = vpack.c.bf16 %v2290_v23, %v2288_v34 }
 0x627   : > { %3344 = vtanh.f32 %v2313_v25  ;;  %v2314_v8 = vunpack.c.l.bf16 %v2302_v42  ;;  %v2998_v25 = vld [vmem:[%s4570_s3 + $0x68] sm:$0xff] }
 0x628   : > { %v2263_v27 = vpop.f32.mrf.mxu2  ;;  %3346 = vtanh.f32 %v2315_v51 }
 0x629   : > { %v2264_v37 = vadd.f32 %v2263_v27, %v2200_v38 }
 0x62a   : > { %v2292_v59 = vpop.f32.mrf.mxu3 }
 0x62b   : > { %v2293_v21 = vadd.f32 %v2292_v59, %v2200_v38 }
 0x62d   : > { %v3345_v52 = vpop.eup %3344 }
 0x62e   : > { %v3347_v41 = vpop.eup %3346 }
 0x62f   : > { %v2341_v60 = vpack.c.bf16 %v3347_v41, %v3345_v52 }
 0x630   : > { %v2265_v4 = vpop.f32.mrf.mxu2 }
 0x631   : > { %v2266_v10 = vadd.f32 %v2265_v4, %v4430_v28  ;;  %v2997_v4 = vld [vmem:[%s4570_s3 + $0x60] sm:$0xff] }
 0x632   : > { %v2294_v61 = vpop.f32.mrf.mxu3 }
 0x633   : > { %v2303_v18 = vpack.c.bf16 %v2266_v10, %v2264_v37  ;;  %v2295_v22 = vadd.f32 %v2294_v61, %v4430_v28  ;;  %v2316_v28 = vunpack.c.h.bf16 %v2302_v42  ;;  %v2999_v37 = vld [vmem:[%s4570_s3 + $0x70] sm:$0xff]  ;;  %v3000_v10 = vld [vmem:[%s4570_s3 + $0x78] sm:$0xff] }
 0x635   : > { %v2317_v54 = vunpack.c.l.bf16 %v2303_v18  ;;  %v2319_v44 = vunpack.c.h.bf16 %v2303_v18  ;;  %v2304_v43 = vpack.c.bf16 %v2295_v22, %v2293_v21 }
 0x637   : > { %3348 = vtanh.f32 %v2317_v54  ;;  %v2318_v1 = vunpack.c.l.bf16 %v2304_v43  ;;  %v2320_v30 = vunpack.c.h.bf16 %v2304_v43  ;;  %v2389_v43 = vpop.permute.xlu0 %2388 }
 0x638   : > { %3350 = vtanh.f32 %v2319_v44 }
 0x639   : > { %3352 = vtanh.f32 %v2318_v1 }
 0x63a   : > { %3354 = vtanh.f32 %v2320_v30 }
 0x63b   : > { %3356 = vtanh.f32 %v2314_v8 }
 0x63c   : > { %3358 = vtanh.f32 %v2316_v28 }
 0x63d   : > { %v3349_v13 = vpop.eup %3348  ;;  %3360 = vtanh.f32 %v2309_v48 }
 0x63e   : > { %v3351_v46 = vpop.eup %3350  ;;  %3362 = vtanh.f32 %v2311_v62 }
 0x63f   : > { %v3353_v11 = vpop.eup %3352  ;;  %3364 = vtanh.f32 %v2310_v47  ;;  %v2343_v58 = vpack.c.bf16 %v3351_v46, %v3349_v13 }
 0x640   : > { %v3355_v36 = vpop.eup %3354  ;;  %3366 = vtanh.f32 %v2312_v5 }
 0x641   : > { %v3357_v7 = vpop.eup %3356  ;;  %3368 = vtanh.f32 %v2305_v57  ;;  %2437 = vmatpush.bf16.msra.mxu0 %v2343_v58  ;;  %v2344_v40 = vpack.c.bf16 %v3355_v36, %v3353_v11  ;;  %v2369_v57 = vpop.permute.xlu1 %2368 }
 0x642   : > { %v3359_v49 = vpop.eup %3358  ;;  %3370 = vtanh.f32 %v2307_v9 }
 0x643   : > { %v3361_v38 = vpop.eup %3360  ;;  %3372 = vtanh.f32 %v2306_v3  ;;  %2466 = vmatpush.bf16.msra.mxu1 %v2344_v40  ;;  %v2342_v20 = vpack.c.bf16 %v3359_v49, %v3357_v7  ;;  %v2364_v7 = vpop.permute.xlu0 %2363 }
 0x644   : > { %v3363_v24 = vpop.eup %3362  ;;  %3374 = vtanh.f32 %v2308_v56 }
 0x645   : > { %v3365_v45 = vpop.eup %3364  ;;  %2438 = vmatpush.bf16.msra.mxu0 %v2341_v60  ;;  %v2339_v59 = vpack.c.bf16 %v3363_v24, %v3361_v38 }
 0x646   : > { %v3367_v27 = vpop.eup %3366 }
 0x647   : > { %v3369_v55 = vpop.eup %3368  ;;  %2467 = vmatpush.bf16.msra.mxu1 %v2342_v20  ;;  %v2340_v33 = vpack.c.bf16 %v3367_v27, %v3365_v45 }
 0x648   : > { %v3371_v15 = vpop.eup %3370 }
 0x649   : > { %v3373_v32 = vpop.eup %3372  ;;  %2439 = vmatpush.bf16.msra.mxu0 %v2339_v59  ;;  %v2337_v17 = vpack.c.bf16 %v3371_v15, %v3369_v55 }
 0x64a   : > { %v3375_v23 = vpop.eup %3374 }
 0x64b   : > { %2468 = vmatpush.bf16.msra.mxu1 %v2340_v33  ;;  %v2338_v34 = vpack.c.bf16 %v3375_v23, %v3373_v32 }
 0x64d   : > { %2440 = vmatpush.bf16.msra.mxu0 %v2337_v17 }
 0x64f   : > { %2469 = vmatpush.bf16.msra.mxu1 %v2338_v34 }
 0x650   : > { %2954 = vmatmul.msk.bf16.vlgmr.msra.gmra.mxu0 %vm683_vm0, %v2997_v4 }
 0x652   : > { %2958 = vmatmul.msk.bf16.vlgmr.msra.gmra.mxu1 %vm683_vm0, %v2997_v4 }
 0x660   : > { %2955 = vmatmul.msk.bf16.gmra.mxu0 %vm683_vm0, %v2998_v25 }
 0x662   : > { %2959 = vmatmul.msk.bf16.gmra.mxu1 %vm683_vm0, %v2998_v25 }
 0x670   : > { %2956 = vmatmul.msk.bf16.gmra.mxu0 %vm683_vm0, %v2999_v37 }
 0x672   : > { %2960 = vmatmul.msk.bf16.gmra.mxu1 %vm683_vm0, %v2999_v37 }
 0x680   : > { %2957 = vmatmul.msk.bf16.gmra.mxu0 %vm683_vm0, %v3000_v10 }
 0x682   : > { %2961 = vmatmul.msk.bf16.gmra.mxu1 %vm683_vm0, %v3000_v10 }
 0x6cd   : > { %v2442_v63 = vpop.f32.mrf.mxu0 }
 0x6ce   : > { %v2443_v38 = vadd.f32 %v2442_v63, %v2364_v7 }
 0x6cf   : > { %v2471_v0 = vpop.f32.mrf.mxu1 }
 0x6d0   : > { %v2472_v55 = vadd.f32 %v2471_v0, %v2364_v7 }
 0x6d5   : > { %v2444_v51 = vpop.f32.mrf.mxu0 }
 0x6d6   : > { %v2445_v58 = vadd.f32 %v2444_v51, %v2369_v57 }
 0x6d7   : > { %v2473_v61 = vpop.f32.mrf.mxu1 }
 0x6d8   : > { %v2474_v60 = vadd.f32 %v2473_v61, %v2369_v57  ;;  %v2491_v59 = vpack.c.bf16 %v2445_v58, %v2443_v38 }
 0x6da   : > { %v2492_v23 = vpack.c.bf16 %v2474_v60, %v2472_v55  ;;  %v2499_v37 = vunpack.c.l.bf16 %v2491_v59  ;;  %v2501_v63 = vunpack.c.h.bf16 %v2491_v59 }
 0x6dc   : > { %v2500_v0 = vunpack.c.l.bf16 %v2492_v23 }
 0x6dd   : > { %v2447_v42 = vpop.f32.mrf.mxu0 }
 0x6de   : > { %v2448_v47 = vadd.f32 %v2447_v42, %v2374_v53 }
 0x6df   : > { %v2476_v21 = vpop.f32.mrf.mxu1 }
 0x6e0   : > { %v2477_v36 = vadd.f32 %v2476_v21, %v2374_v53  ;;  %v2502_v21 = vunpack.c.h.bf16 %v2492_v23 }
 0x6e5   : > { %v2449_v18 = vpop.f32.mrf.mxu0 }
 0x6e6   : > { %v2450_v26 = vadd.f32 %v2449_v18, %v4452_v14 }
 0x6e7   : > { %v2478_v22 = vpop.f32.mrf.mxu1 }
 0x6e8   : > { %v2479_v41 = vadd.f32 %v2478_v22, %v4452_v14  ;;  %v2493_v56 = vpack.c.bf16 %v2450_v26, %v2448_v47 }
 0x6ea   : > { %v2494_v24 = vpack.c.bf16 %v2479_v41, %v2477_v36  ;;  %v2503_v15 = vunpack.c.l.bf16 %v2493_v56  ;;  %v2505_v32 = vunpack.c.h.bf16 %v2493_v56 }
 0x6ec   : > { %v2504_v17 = vunpack.c.l.bf16 %v2494_v24  ;;  %v2506_v34 = vunpack.c.h.bf16 %v2494_v24 }
 0x6ed   : > { %v2452_v50 = vpop.f32.mrf.mxu0 }
 0x6ee   : > { %v2453_v1 = vadd.f32 %v2452_v50, %v4446_v16 }
 0x6ef   : > { %v2481_v6 = vpop.f32.mrf.mxu1 }
 0x6f0   : > { %v2482_v48 = vadd.f32 %v2481_v6, %v4446_v16 }
 0x6f5   : > { %v2454_v54 = vpop.f32.mrf.mxu0 }
 0x6f6   : > { %v2455_v12 = vadd.f32 %v2454_v54, %v2389_v43 }
 0x6f7   : > { %v2483_v44 = vpop.f32.mrf.mxu1 }
 0x6f8   : > { %v2495_v30 = vpack.c.bf16 %v2455_v12, %v2453_v1  ;;  %v2484_v28 = vadd.f32 %v2483_v44, %v2389_v43 }
 0x6fa   : > { %v2507_v62 = vunpack.c.l.bf16 %v2495_v30  ;;  %v2509_v5 = vunpack.c.h.bf16 %v2495_v30  ;;  %v2496_v46 = vpack.c.bf16 %v2484_v28, %v2482_v48  ;;  %v2544_v48 = vpop.permute.xlu0 %2543 }
 0x6fc   : > { %3376 = vtanh.f32 %v2507_v62  ;;  %v2508_v14 = vunpack.c.l.bf16 %v2496_v46  ;;  %v2510_v27 = vunpack.c.h.bf16 %v2496_v46 }
 0x6fd   : > { %v2457_v31 = vpop.f32.mrf.mxu0  ;;  %3378 = vtanh.f32 %v2509_v5 }
 0x6fe   : > { %v2458_v52 = vadd.f32 %v2457_v31, %v2394_v29 }
 0x6ff   : > { %v2486_v8 = vpop.f32.mrf.mxu1 }
 0x700   : > { %v2487_v9 = vadd.f32 %v2486_v8, %v2394_v29 }
 0x702   : > { %v3377_v33 = vpop.eup %3376 }
 0x703   : > { %v3379_v4 = vpop.eup %3378 }
 0x704   : > { %v2535_v29 = vpack.c.bf16 %v3379_v4, %v3377_v33 }
 0x705   : > { %v2459_v39 = vpop.f32.mrf.mxu0 }
 0x706   : > { %v2460_v35 = vadd.f32 %v2459_v39, %v2399_v2  ;;  %v2539_v39 = vld [vmem:[%s4572_s5] sm:$0x1] }
 0x707   : > { %v2488_v13 = vpop.f32.mrf.mxu1 }
 0x708   : > { %v2497_v11 = vpack.c.bf16 %v2460_v35, %v2458_v52  ;;  %v2489_v3 = vadd.f32 %v2488_v13, %v2399_v2  ;;  %v2546_v52 = vperm.slane %v2544_v48, 0 }
 0x70a   : > { %v2511_v40 = vunpack.c.l.bf16 %v2497_v11  ;;  %v2513_v16 = vunpack.c.h.bf16 %v2497_v11  ;;  %v2498_v49 = vpack.c.bf16 %v2489_v3, %v2487_v9 }
 0x70c   : > { %3380 = vtanh.f32 %v2511_v40  ;;  %v2512_v45 = vunpack.c.l.bf16 %v2498_v49  ;;  %v2514_v20 = vunpack.c.h.bf16 %v2498_v49 }
 0x70d   : > { %3382 = vtanh.f32 %v2513_v16 }
 0x70e   : > { %3384 = vtanh.f32 %v2512_v45 }
 0x70f   : > { %3386 = vtanh.f32 %v2514_v20 }
 0x710   : > { %3388 = vtanh.f32 %v2508_v14 }
 0x711   : > { %3390 = vtanh.f32 %v2510_v27 }
 0x712   : > { %v3381_v25 = vpop.eup %3380  ;;  %3392 = vtanh.f32 %v2503_v15 }
 0x713   : > { %v3383_v10 = vpop.eup %3382  ;;  %3394 = vtanh.f32 %v2505_v32 }
 0x714   : > { %v3385_v51 = vpop.eup %3384  ;;  %3396 = vtanh.f32 %v2504_v17  ;;  %v2537_v61 = vpack.c.bf16 %v3383_v10, %v3381_v25 }
 0x715   : > { %v3387_v42 = vpop.eup %3386  ;;  %3398 = vtanh.f32 %v2506_v34 }
 0x716   : > { %v3389_v18 = vpop.eup %3388  ;;  %3400 = vtanh.f32 %v2499_v37  ;;  %2554 = vmatpush.bf16.msra.mxu2 %v2537_v61  ;;  %v2538_v22 = vpack.c.bf16 %v3387_v42, %v3385_v51 }
 0x717   : > { %v3391_v50 = vpop.eup %3390  ;;  %3402 = vtanh.f32 %v2501_v63 }
 0x718   : > { %v3393_v6 = vpop.eup %3392  ;;  %3404 = vtanh.f32 %v2500_v0  ;;  %2567 = vmatpush.bf16.msra.mxu3 %v2538_v22  ;;  %v2536_v44 = vpack.c.bf16 %v3391_v50, %v3389_v18 }
 0x719   : > { %v3395_v2 = vpop.eup %3394  ;;  %3406 = vtanh.f32 %v2502_v21 }
 0x71a   : > { %v3397_v54 = vpop.eup %3396  ;;  %2555 = vmatpush.bf16.msra.mxu2 %v2535_v29  ;;  %v2533_v53 = vpack.c.bf16 %v3395_v2, %v3393_v6 }
 0x71b   : > { %v3399_v43 = vpop.eup %3398 }
 0x71c   : > { %v3401_v31 = vpop.eup %3400  ;;  %2568 = vmatpush.bf16.msra.mxu3 %v2536_v44  ;;  %v2534_v1 = vpack.c.bf16 %v3399_v43, %v3397_v54 }
 0x71d   : > { %v3403_v12 = vpop.eup %3402 }
 0x71e   : > { %v3405_v8 = vpop.eup %3404  ;;  %2556 = vmatpush.bf16.msra.mxu2 %v2533_v53  ;;  %v2531_v28 = vpack.c.bf16 %v3403_v12, %v3401_v31 }
 0x71f   : > { %v3407_v30 = vpop.eup %3406 }
 0x720   : > { %2569 = vmatpush.bf16.msra.mxu3 %v2534_v1  ;;  %v2532_v26 = vpack.c.bf16 %v3407_v30, %v3405_v8 }
 0x722   : > { %2557 = vmatpush.bf16.msra.mxu2 %v2531_v28 }
 0x724   : > { %2570 = vmatpush.bf16.msra.mxu3 %v2532_v26 }
 0x725   : > { %2962 = vmatmul.msk.bf16.vlgmr.msra.gmra.mxu2 %vm683_vm0, %v2539_v39 }
 0x727   : > { %2963 = vmatmul.msk.bf16.vlgmr.msra.gmra.mxu3 %vm683_vm0, %v2539_v39 }
 0x7a8   : > { %v2559_v62 = vpop.f32.mrf.mxu2 }
 0x7a9   : > { %v2560_v41 = vadd.f32 %v2559_v62, %v2546_v52 }
 0x7aa   : > { %v2572_v35 = vpop.f32.mrf.mxu3 }
 0x7ab   : > { %v2573_v47 = vadd.f32 %v2572_v35, %v2546_v52 }
 0x7ad   : > { %v2578_v5 = vrot.slane %v2573_v47, 7 }
 0x7af   : > { %v2579_v13 = vsel %vm1430_vm1, %v2560_v41, %v2578_v5 }
 0x7b0   : > { %v2561_v57 = vpop.f32.mrf.mxu2  ;;  %2964 = vst.msk [vmem:[%s4463_s23 + $0x2] sm:$0x3] %vm4458_vm2, %v2579_v13 }
 0x7b1   : > { %3435 = shalt.err (!%p3432_p3)
}
 0x7b2   : > { %3001 = dma.vmem_to_hbm [thread:$0]  (%p3555_p5), %s2597_s30, 64, %s2599_s6, %s2584_s19   ;;  %v2574_v19 = vpop.f32.mrf.mxu3 }
 0x7b3 PF: > { %p3007_p4 = scmp.ge.s32.totalorder %s3470_s29, 2  ;;  %s2610_s21 = sand.u32 1, %s3458_s26  }
 0x7b4   : > { %s2611_s23 = scalar_lea.sflag [#allocation4], %s2610_s21 }
 0x7b5   : > { %p3004_p7 = pnand %p3007_p4, %p3559_p6 }
 0x7b7   : > { %p3005_p8 = pneg %p3004_p7 }
 0x7b9   : > { %3453 = dma.done.wait (%p3005_p8), %s2611_s23, 64  }
 0x7ba   : > { %3455 = vsyncadd (%p3005_p8), %s2611_s23, 4294967232  ;;  %p19_p9 = scmp.ge.s32.totalorder %s3541_s8, 4   ;;  %s4585_s26 = smov %s3462_s27 }
 0x7bb   : > { %s4586_s27 = smov %s3466_s28  ;;  %s4587_s28 = smov %s3553_s11 }
 0x7bc   : > { %s4588_s29 = smov %s3541_s8  ;;  %21 = sbr.rel (!%p19_p9) target bundleno = 6 (0x6), region = 95 }
 0x7c1   :  { %2617 = vsyncpa [#allocation4], 1 }
 0x7c2   :  { %2619 = vsyncpa [#allocation4 + $0x1], 1 }

</bundles_post_ra>
